<compile_context>
chip_gen: v7x
topology: tpu7x:2x2x1
jax: 0.10.0
libtpu: 0.0.40
codegen_flags: <defaults>
</compile_context>

<pallas_src>
import functools

import jax
import jax.numpy as jnp
from jax.experimental import pallas as pl
from jax.experimental.pallas import tpu as pltpu


def _crop_kernel(off_ref, img_ref, out_ref, band_ref, sem,
                 *, tw_rows, th_cols, K):
    """One grid step = K crops.

    off_ref : (2 * n_pad,) int32 SMEM; [2n] = left (col offset), [2n+1] = upper
              (row offset) for crop n.
    img_ref : (C, H, W) image, left in HBM (memory_space=pl.ANY).
    out_ref : (1, C, tw_rows, K * th_cols) output block in VMEM; crop k lives
              at lanes [k*th, (k+1)*th) so the block's HBM writeback is
              lane-dense.
    band_ref: (K, C, 3*tw_rows, W) VMEM scratch.  The DMA for crop k fills rows
              [tw, 2*tw); the margin rows are NEVER written (they hold garbage)
              -- any read that lands in them corresponds to an out-of-bounds
              crop row and is zeroed by the validity mask below.
    sem     : (K,) DMA completion semaphores.
    """
    C, H, W = img_ref.shape
    n0 = pl.program_id(0) * K

    # ---- scalar setup + issue all K band DMAs (all scalar work done before
    #      any wait; crop k's fetch overlaps crops 0..k-1's compute).
    lefts, uppers, starts, col_shifts, copies = [], [], [], [], []
    for k in range(K):
        left = off_ref[2 * (n0 + k)]
        upper = off_ref[2 * (n0 + k) + 1]
        row_start = jnp.clip(upper, 0, H - tw_rows)
        # Band row (tw + q) holds image row (row_start + q); requested crop row
        # r sits at band row (tw + shift + r).  The clamp on `shift` only hits
        # when the crop is entirely outside the image, where the mask zeroes
        # every row anyway.
        shift = jnp.clip(upper - row_start, -tw_rows, tw_rows)
        copy = pltpu.make_async_copy(
            img_ref.at[:, pl.ds(row_start, tw_rows), :],
            band_ref.at[k, :, pl.ds(tw_rows, tw_rows), :],
            sem.at[k],
        )
        copy.start()
        lefts.append(left)
        uppers.append(upper)
        starts.append(tw_rows + shift)
        # pltpu.roll == jnp.roll semantics: rolling by -left brings image
        # column `left` to lane 0.
        col_shifts.append(jnp.mod(-left, W))
        copies.append(copy)

    # Crop-independent index grids, built while the DMAs are in flight.
    r_idx = jax.lax.broadcasted_iota(jnp.int32, (tw_rows, th_cols), 0)
    c_idx = jax.lax.broadcasted_iota(jnp.int32, (tw_rows, th_cols), 1)
    fill = jnp.zeros((), dtype=out_ref.dtype)

    for k in range(K):
        # PIL zero-fill: row r / col x of crop k is valid iff it lies inside
        # the image.  Built before this crop's wait so it overlaps the DMA.
        valid = ((r_idx + uppers[k] >= 0) & (r_idx + uppers[k] < H) &
                 (c_idx + lefts[k] >= 0) & (c_idx + lefts[k] < W))
        copies[k].wait()
        for c in range(C):
            # Dynamic sublane slice picks the tw crop rows out of the band;
            # rows that fall in the (unwritten) margins are masked to zero.
            rows_c = band_ref[k, c, pl.ds(starts[k], tw_rows), :]      # (tw, W)
            # Dynamic lane roll brings columns [left, left+th) to lanes [0, th).
            rolled = pltpu.roll(rows_c, col_shifts[k], axis=1)         # (tw, W)
            out_ref[0, c, :, k * th_cols:(k + 1) * th_cols] = jnp.where(
                valid, rolled[:, :th_cols], fill).astype(out_ref.dtype)


def random_crop_batch(img, centers_xy, *, size):
    """Crop `img` (C, H, W) around each (cx, cy) center -> (N, C, tw, th)."""
    th, tw = size
    C, H, W = img.shape

    # --- get_params glue (mirrors the PyTorch staticmethod) ---
    # PIL img.size is (width, height) and the module does `h, w = img.size`.
    h, w = W, H
    if h + 1 < th or w + 1 < tw:
        raise ValueError(
            f"Required crop size {(th, tw)} is larger then input image size {(h, w)}")
    if not (tw <= H and th <= W):
        # TODO(synk): crops larger than the image (allowed by the +1 slack above)
        # are not supported by the band-DMA path.
        raise NotImplementedError("crop larger than the image is not supported")

    centers_xy = jnp.asarray(centers_xy, jnp.int32).reshape(-1, 2)
    n_crops = centers_xy.shape[0]
    w_half = int(tw / 2.0)
    h_half = int(th / 2.0)
    # offsets[n] = [left i, upper j]; device data via scalar prefetch, so one
    # compilation serves every crop position.
    offsets = centers_xy - jnp.array([w_half, h_half], jnp.int32)
    if w == tw and h == th:  # module fast path: crop box == whole image
        offsets = jnp.zeros_like(offsets)

    # --- choose K = crops per grid step: lane-dense output + DMA overlap,
    #     capped so the band scratch stays well inside VMEM (v7x: 64 MiB/TC,
    #     32 MiB scoped default).
    itemsize = jnp.dtype(img.dtype).itemsize
    band_bytes = C * 3 * tw * W * itemsize
    K = max(1, min((128 + th - 1) // th, n_crops))
    K = max(1, min(K, (12 * 1024 * 1024) // max(band_bytes, 1)))
    n_steps = (n_crops + K - 1) // K
    n_pad = n_steps * K
    if n_pad != n_crops:  # pad with the last crop; extras are sliced off below
        offsets = jnp.concatenate(
            [offsets, jnp.tile(offsets[-1:], (n_pad - n_crops, 1))], axis=0)
    offsets_flat = offsets.reshape(-1)  # 1-D SMEM: avoids the (N,2)->[8,128] pad

    vmem_need = K * band_bytes + 2 * C * tw * K * th * itemsize + (1 << 20)
    vmem_limit = int(max(32 * 1024 * 1024, min(64 * 1024 * 1024, 2 * vmem_need)))

    kernel = functools.partial(_crop_kernel, tw_rows=tw, th_cols=th, K=K)
    out = pl.pallas_call(
        kernel,
        out_shape=jax.ShapeDtypeStruct((n_steps, C, tw, K * th), img.dtype),
        grid_spec=pltpu.PrefetchScalarGridSpec(
            num_scalar_prefetch=1,
            grid=(n_steps,),
            in_specs=[pl.BlockSpec(memory_space=pl.ANY)],    # image stays in HBM
            out_specs=pl.BlockSpec((1, C, tw, K * th), lambda g, off: (g, 0, 0, 0)),
            scratch_shapes=[
                pltpu.VMEM((K, C, 3 * tw, W), img.dtype),    # per-crop row bands
                pltpu.SemaphoreType.DMA((K,)),
            ]),
        compiler_params=pltpu.CompilerParams(
            dimension_semantics=("parallel",),
            vmem_limit_bytes=vmem_limit),
    )(offsets_flat, img)

    # Unpack the lane-packed crops: (n_steps, C, tw, K, th) -> (n_pad, C, tw, th).
    out = out.reshape(n_steps, C, tw, K, th).transpose(0, 3, 1, 2, 4)
    return out.reshape(n_pad, C, tw, th)[:n_crops]


def random_crop(img, *, size, idx, x_list, y_list, padding=None):
    """JAX/Pallas equivalent of RandomCrop.forward on a CHW array."""
    # TODO(synk): padding / pad_if_needed / fill / padding_mode variants are not
    # implemented; only the default path (padding=None, pad_if_needed=False).
    assert padding is None
    centers = jnp.stack([jnp.asarray(x_list, jnp.int32),
                         jnp.asarray(y_list, jnp.int32)], axis=-1)
    return random_crop_batch(img, centers[idx][None, :], size=size)[0]


if __name__ == "__main__":
    key = jax.random.PRNGKey(0)
    C, H, W = 4, 32, 128
    img = jax.random.normal(key, (C, H, W), dtype=jnp.float32)

    size = (8, 8)               # (th, tw)
    th, tw = size
    # crop centers: interior, top/left OOB, bottom/right OOB, corner
    x_list = [100, 5, 126, 64, 0]
    y_list = [16, 2, 30, 3, 0]

    # pure-JAX reference with PIL-style zero fill
    padded = jnp.pad(img, ((0, 0), (tw, tw), (th, th)))

    def ref_crop(cx, cy):
        i = cx - tw // 2        # left / column offset
        j = cy - th // 2        # upper / row offset
        return padded[:, j + tw: j + 2 * tw, i + th: i + 2 * th]

    # Batched path: all dataloader crop centers in a single pallas_call.
    centers = jnp.stack([jnp.asarray(x_list, jnp.int32),
                         jnp.asarray(y_list, jnp.int32)], axis=-1)
    outs = jax.block_until_ready(random_crop_batch(img, centers, size=size))
    assert outs.shape == (len(x_list), C, tw, th), outs.shape
    for n, (cx, cy) in enumerate(zip(x_list, y_list)):
        assert jnp.array_equal(outs[n], ref_crop(cx, cy)), f"mismatch for crop {n}"

    # Module-equivalent single-crop path (RandomCrop(size, idx, ...).forward(img)).
    idx = 2
    out = jax.block_until_ready(
        random_crop(img, size=size, idx=idx, x_list=x_list, y_list=y_list))
    assert out.shape == (C, tw, th), out.shape
    assert jnp.array_equal(out, ref_crop(x_list[idx], y_list[idx]))

    print("KERNEL_OK")
</pallas_src>

<mosaic_0001>
module attributes {stable_mosaic.version = 11 : i64} {
  func.func @_crop_kernel(%arg0: i32, %arg1: memref<10xi32, #tpu.memory_space<smem>>, %arg2: memref<4x32x128xf32, #tpu.memory_space<any>>, %arg3: memref<1x4x8x40xf32, #tpu.memory_space<vmem>>, %arg4: memref<5x4x24x128xf32, #tpu.memory_space<vmem>>, %arg5: memref<5x!tpu.dma_semaphore, #tpu.memory_space<semaphore_mem>>) attributes {dimension_semantics = [#tpu.dimension_semantics<parallel>], iteration_bounds = array<i64: 1>, scalar_prefetch = 1 : i64, scratch_operands = 2 : i64, tpu.core_type = #tpu.core_type<tc>, window_params = [{}, {transform_indices = @transform_1, window_bounds = array<i64: 1, 4, 8, 40>}]} {
    %c5_i32 = arith.constant 5 : i32
    %0 = arith.muli %arg0, %c5_i32 : i32
    %c0_i32 = arith.constant 0 : i32
    %1 = arith.addi %0, %c0_i32 : i32
    %c2_i32 = arith.constant 2 : i32
    %2 = arith.muli %c2_i32, %1 : i32
    %3 = arith.index_cast %2 : i32 to index
    %4 = memref.load %arg1[%3] : memref<10xi32, #tpu.memory_space<smem>>
    %c0_i32_0 = arith.constant 0 : i32
    %5 = arith.addi %0, %c0_i32_0 : i32
    %c2_i32_1 = arith.constant 2 : i32
    %6 = arith.muli %c2_i32_1, %5 : i32
    %c1_i32 = arith.constant 1 : i32
    %7 = arith.addi %6, %c1_i32 : i32
    %8 = arith.index_cast %7 : i32 to index
    %9 = memref.load %arg1[%8] : memref<10xi32, #tpu.memory_space<smem>>
    %c0_i32_2 = arith.constant 0 : i32
    %c24_i32 = arith.constant 24 : i32
    %10 = arith.maxsi %c0_i32_2, %9 : i32
    %11 = arith.minsi %c24_i32, %10 : i32
    %12 = arith.subi %9, %11 : i32
    %c-8_i32 = arith.constant -8 : i32
    %c8_i32 = arith.constant 8 : i32
    %13 = arith.maxsi %c-8_i32, %12 : i32
    %14 = arith.minsi %c8_i32, %13 : i32
    %c0_i32_3 = arith.constant 0 : i32
    %c0_i32_4 = arith.constant 0 : i32
    %c0_i32_5 = arith.constant 0 : i32
    %c0_i32_6 = arith.constant 0 : i32
    %15 = tpu.memref_slice %arg2[%c0_i32_5, %11, %c0_i32_6] : memref<4x32x128xf32, #tpu.memory_space<any>> -> memref<4x8x128xf32, #tpu.memory_space<any>>
    %c0_i32_7 = arith.constant 0 : i32
    %c8_i32_8 = arith.constant 8 : i32
    %c0_i32_9 = arith.constant 0 : i32
    %16 = tpu.memref_slice %arg4[%c0_i32_3, %c0_i32_7, %c8_i32_8, %c0_i32_9] : memref<5x4x24x128xf32, #tpu.memory_space<vmem>> -> memref<1x4x8x128xf32, #tpu.memory_space<vmem>>
    %17 = tpu.memref_squeeze %16 : memref<1x4x8x128xf32, #tpu.memory_space<vmem>> -> memref<4x8x128xf32, #tpu.memory_space<vmem>>
    %18 = tpu.memref_slice %arg5[%c0_i32_4] : memref<5x!tpu.dma_semaphore, #tpu.memory_space<semaphore_mem>> -> memref<1x!tpu.dma_semaphore, #tpu.memory_space<semaphore_mem>>
    %19 = tpu.memref_squeeze %18 : memref<1x!tpu.dma_semaphore, #tpu.memory_space<semaphore_mem>> -> memref<!tpu.dma_semaphore, #tpu.memory_space<semaphore_mem>>
    tpu.enqueue_dma source(%15 : memref<4x8x128xf32, #tpu.memory_space<any>>) target(%17 : memref<4x8x128xf32, #tpu.memory_space<vmem>>) target_semaphore(%19 : memref<!tpu.dma_semaphore, #tpu.memory_space<semaphore_mem>>)
    %c8_i32_10 = arith.constant 8 : i32
    %20 = arith.addi %c8_i32_10, %14 : i32
    %c0_i32_11 = arith.constant 0 : i32
    %21 = arith.subi %c0_i32_11, %4 : i32
    %c128_i32 = arith.constant 128 : i32
    %c0_i32_12 = arith.constant 0 : i32
    %22 = arith.cmpi eq, %c128_i32, %c0_i32_12 : i32
    %c1_i32_13 = arith.constant 1 : i32
    %23 = arith.select %22, %c1_i32_13, %c128_i32 : i32
    %24 = arith.remsi %21, %23 : i32
    %c0_i32_14 = arith.constant 0 : i32
    %25 = arith.cmpi ne, %24, %c0_i32_14 : i32
    %c0_i32_15 = arith.constant 0 : i32
    %26 = arith.cmpi slt, %24, %c0_i32_15 : i32
    %c0_i32_16 = arith.constant 0 : i32
    %27 = arith.cmpi slt, %23, %c0_i32_16 : i32
    %28 = arith.xori %26, %27 : i1
    %29 = arith.andi %28, %25 : i1
    %30 = arith.addi %24, %23 : i32
    %31 = arith.select %29, %30, %24 : i32
    %c1_i32_17 = arith.constant 1 : i32
    %32 = arith.addi %0, %c1_i32_17 : i32
    %c2_i32_18 = arith.constant 2 : i32
    %33 = arith.muli %c2_i32_18, %32 : i32
    %34 = arith.index_cast %33 : i32 to index
    %35 = memref.load %arg1[%34] : memref<10xi32, #tpu.memory_space<smem>>
    %c1_i32_19 = arith.constant 1 : i32
    %36 = arith.addi %0, %c1_i32_19 : i32
    %c2_i32_20 = arith.constant 2 : i32
    %37 = arith.muli %c2_i32_20, %36 : i32
    %c1_i32_21 = arith.constant 1 : i32
    %38 = arith.addi %37, %c1_i32_21 : i32
    %39 = arith.index_cast %38 : i32 to index
    %40 = memref.load %arg1[%39] : memref<10xi32, #tpu.memory_space<smem>>
    %c0_i32_22 = arith.constant 0 : i32
    %c24_i32_23 = arith.constant 24 : i32
    %41 = arith.maxsi %c0_i32_22, %40 : i32
    %42 = arith.minsi %c24_i32_23, %41 : i32
    %43 = arith.subi %40, %42 : i32
    %c-8_i32_24 = arith.constant -8 : i32
    %c8_i32_25 = arith.constant 8 : i32
    %44 = arith.maxsi %c-8_i32_24, %43 : i32
    %45 = arith.minsi %c8_i32_25, %44 : i32
    %c1_i32_26 = arith.constant 1 : i32
    %c1_i32_27 = arith.constant 1 : i32
    %c0_i32_28 = arith.constant 0 : i32
    %c0_i32_29 = arith.constant 0 : i32
    %46 = tpu.memref_slice %arg2[%c0_i32_28, %42, %c0_i32_29] : memref<4x32x128xf32, #tpu.memory_space<any>> -> memref<4x8x128xf32, #tpu.memory_space<any>>
    %c0_i32_30 = arith.constant 0 : i32
    %c8_i32_31 = arith.constant 8 : i32
    %c0_i32_32 = arith.constant 0 : i32
    %47 = tpu.memref_slice %arg4[%c1_i32_26, %c0_i32_30, %c8_i32_31, %c0_i32_32] : memref<5x4x24x128xf32, #tpu.memory_space<vmem>> -> memref<1x4x8x128xf32, #tpu.memory_space<vmem>>
    %48 = tpu.memref_squeeze %47 : memref<1x4x8x128xf32, #tpu.memory_space<vmem>> -> memref<4x8x128xf32, #tpu.memory_space<vmem>>
    %49 = tpu.memref_slice %arg5[%c1_i32_27] : memref<5x!tpu.dma_semaphore, #tpu.memory_space<semaphore_mem>> -> memref<1x!tpu.dma_semaphore, #tpu.memory_space<semaphore_mem>>
    %50 = tpu.memref_squeeze %49 : memref<1x!tpu.dma_semaphore, #tpu.memory_space<semaphore_mem>> -> memref<!tpu.dma_semaphore, #tpu.memory_space<semaphore_mem>>
    tpu.enqueue_dma source(%46 : memref<4x8x128xf32, #tpu.memory_space<any>>) target(%48 : memref<4x8x128xf32, #tpu.memory_space<vmem>>) target_semaphore(%50 : memref<!tpu.dma_semaphore, #tpu.memory_space<semaphore_mem>>)
    %c8_i32_33 = arith.constant 8 : i32
    %51 = arith.addi %c8_i32_33, %45 : i32
    %c0_i32_34 = arith.constant 0 : i32
    %52 = arith.subi %c0_i32_34, %35 : i32
    %c128_i32_35 = arith.constant 128 : i32
    %c0_i32_36 = arith.constant 0 : i32
    %53 = arith.cmpi eq, %c128_i32_35, %c0_i32_36 : i32
    %c1_i32_37 = arith.constant 1 : i32
    %54 = arith.select %53, %c1_i32_37, %c128_i32_35 : i32
    %55 = arith.remsi %52, %54 : i32
    %c0_i32_38 = arith.constant 0 : i32
    %56 = arith.cmpi ne, %55, %c0_i32_38 : i32
    %c0_i32_39 = arith.constant 0 : i32
    %57 = arith.cmpi slt, %55, %c0_i32_39 : i32
    %c0_i32_40 = arith.constant 0 : i32
    %58 = arith.cmpi slt, %54, %c0_i32_40 : i32
    %59 = arith.xori %57, %58 : i1
    %60 = arith.andi %59, %56 : i1
    %61 = arith.addi %55, %54 : i32
    %62 = arith.select %60, %61, %55 : i32
    %c2_i32_41 = arith.constant 2 : i32
    %63 = arith.addi %0, %c2_i32_41 : i32
    %c2_i32_42 = arith.constant 2 : i32
    %64 = arith.muli %c2_i32_42, %63 : i32
    %65 = arith.index_cast %64 : i32 to index
    %66 = memref.load %arg1[%65] : memref<10xi32, #tpu.memory_space<smem>>
    %c2_i32_43 = arith.constant 2 : i32
    %67 = arith.addi %0, %c2_i32_43 : i32
    %c2_i32_44 = arith.constant 2 : i32
    %68 = arith.muli %c2_i32_44, %67 : i32
    %c1_i32_45 = arith.constant 1 : i32
    %69 = arith.addi %68, %c1_i32_45 : i32
    %70 = arith.index_cast %69 : i32 to index
    %71 = memref.load %arg1[%70] : memref<10xi32, #tpu.memory_space<smem>>
    %c0_i32_46 = arith.constant 0 : i32
    %c24_i32_47 = arith.constant 24 : i32
    %72 = arith.maxsi %c0_i32_46, %71 : i32
    %73 = arith.minsi %c24_i32_47, %72 : i32
    %74 = arith.subi %71, %73 : i32
    %c-8_i32_48 = arith.constant -8 : i32
    %c8_i32_49 = arith.constant 8 : i32
    %75 = arith.maxsi %c-8_i32_48, %74 : i32
    %76 = arith.minsi %c8_i32_49, %75 : i32
    %c2_i32_50 = arith.constant 2 : i32
    %c2_i32_51 = arith.constant 2 : i32
    %c0_i32_52 = arith.constant 0 : i32
    %c0_i32_53 = arith.constant 0 : i32
    %77 = tpu.memref_slice %arg2[%c0_i32_52, %73, %c0_i32_53] : memref<4x32x128xf32, #tpu.memory_space<any>> -> memref<4x8x128xf32, #tpu.memory_space<any>>
    %c0_i32_54 = arith.constant 0 : i32
    %c8_i32_55 = arith.constant 8 : i32
    %c0_i32_56 = arith.constant 0 : i32
    %78 = tpu.memref_slice %arg4[%c2_i32_50, %c0_i32_54, %c8_i32_55, %c0_i32_56] : memref<5x4x24x128xf32, #tpu.memory_space<vmem>> -> memref<1x4x8x128xf32, #tpu.memory_space<vmem>>
    %79 = tpu.memref_squeeze %78 : memref<1x4x8x128xf32, #tpu.memory_space<vmem>> -> memref<4x8x128xf32, #tpu.memory_space<vmem>>
    %80 = tpu.memref_slice %arg5[%c2_i32_51] : memref<5x!tpu.dma_semaphore, #tpu.memory_space<semaphore_mem>> -> memref<1x!tpu.dma_semaphore, #tpu.memory_space<semaphore_mem>>
    %81 = tpu.memref_squeeze %80 : memref<1x!tpu.dma_semaphore, #tpu.memory_space<semaphore_mem>> -> memref<!tpu.dma_semaphore, #tpu.memory_space<semaphore_mem>>
    tpu.enqueue_dma source(%77 : memref<4x8x128xf32, #tpu.memory_space<any>>) target(%79 : memref<4x8x128xf32, #tpu.memory_space<vmem>>) target_semaphore(%81 : memref<!tpu.dma_semaphore, #tpu.memory_space<semaphore_mem>>)
    %c8_i32_57 = arith.constant 8 : i32
    %82 = arith.addi %c8_i32_57, %76 : i32
    %c0_i32_58 = arith.constant 0 : i32
    %83 = arith.subi %c0_i32_58, %66 : i32
    %c128_i32_59 = arith.constant 128 : i32
    %c0_i32_60 = arith.constant 0 : i32
    %84 = arith.cmpi eq, %c128_i32_59, %c0_i32_60 : i32
    %c1_i32_61 = arith.constant 1 : i32
    %85 = arith.select %84, %c1_i32_61, %c128_i32_59 : i32
    %86 = arith.remsi %83, %85 : i32
    %c0_i32_62 = arith.constant 0 : i32
    %87 = arith.cmpi ne, %86, %c0_i32_62 : i32
    %c0_i32_63 = arith.constant 0 : i32
    %88 = arith.cmpi slt, %86, %c0_i32_63 : i32
    %c0_i32_64 = arith.constant 0 : i32
    %89 = arith.cmpi slt, %85, %c0_i32_64 : i32
    %90 = arith.xori %88, %89 : i1
    %91 = arith.andi %90, %87 : i1
    %92 = arith.addi %86, %85 : i32
    %93 = arith.select %91, %92, %86 : i32
    %c3_i32 = arith.constant 3 : i32
    %94 = arith.addi %0, %c3_i32 : i32
    %c2_i32_65 = arith.constant 2 : i32
    %95 = arith.muli %c2_i32_65, %94 : i32
    %96 = arith.index_cast %95 : i32 to index
    %97 = memref.load %arg1[%96] : memref<10xi32, #tpu.memory_space<smem>>
    %c3_i32_66 = arith.constant 3 : i32
    %98 = arith.addi %0, %c3_i32_66 : i32
    %c2_i32_67 = arith.constant 2 : i32
    %99 = arith.muli %c2_i32_67, %98 : i32
    %c1_i32_68 = arith.constant 1 : i32
    %100 = arith.addi %99, %c1_i32_68 : i32
    %101 = arith.index_cast %100 : i32 to index
    %102 = memref.load %arg1[%101] : memref<10xi32, #tpu.memory_space<smem>>
    %c0_i32_69 = arith.constant 0 : i32
    %c24_i32_70 = arith.constant 24 : i32
    %103 = arith.maxsi %c0_i32_69, %102 : i32
    %104 = arith.minsi %c24_i32_70, %103 : i32
    %105 = arith.subi %102, %104 : i32
    %c-8_i32_71 = arith.constant -8 : i32
    %c8_i32_72 = arith.constant 8 : i32
    %106 = arith.maxsi %c-8_i32_71, %105 : i32
    %107 = arith.minsi %c8_i32_72, %106 : i32
    %c3_i32_73 = arith.constant 3 : i32
    %c3_i32_74 = arith.constant 3 : i32
    %c0_i32_75 = arith.constant 0 : i32
    %c0_i32_76 = arith.constant 0 : i32
    %108 = tpu.memref_slice %arg2[%c0_i32_75, %104, %c0_i32_76] : memref<4x32x128xf32, #tpu.memory_space<any>> -> memref<4x8x128xf32, #tpu.memory_space<any>>
    %c0_i32_77 = arith.constant 0 : i32
    %c8_i32_78 = arith.constant 8 : i32
    %c0_i32_79 = arith.constant 0 : i32
    %109 = tpu.memref_slice %arg4[%c3_i32_73, %c0_i32_77, %c8_i32_78, %c0_i32_79] : memref<5x4x24x128xf32, #tpu.memory_space<vmem>> -> memref<1x4x8x128xf32, #tpu.memory_space<vmem>>
    %110 = tpu.memref_squeeze %109 : memref<1x4x8x128xf32, #tpu.memory_space<vmem>> -> memref<4x8x128xf32, #tpu.memory_space<vmem>>
    %111 = tpu.memref_slice %arg5[%c3_i32_74] : memref<5x!tpu.dma_semaphore, #tpu.memory_space<semaphore_mem>> -> memref<1x!tpu.dma_semaphore, #tpu.memory_space<semaphore_mem>>
    %112 = tpu.memref_squeeze %111 : memref<1x!tpu.dma_semaphore, #tpu.memory_space<semaphore_mem>> -> memref<!tpu.dma_semaphore, #tpu.memory_space<semaphore_mem>>
    tpu.enqueue_dma source(%108 : memref<4x8x128xf32, #tpu.memory_space<any>>) target(%110 : memref<4x8x128xf32, #tpu.memory_space<vmem>>) target_semaphore(%112 : memref<!tpu.dma_semaphore, #tpu.memory_space<semaphore_mem>>)
    %c8_i32_80 = arith.constant 8 : i32
    %113 = arith.addi %c8_i32_80, %107 : i32
    %c0_i32_81 = arith.constant 0 : i32
    %114 = arith.subi %c0_i32_81, %97 : i32
    %c128_i32_82 = arith.constant 128 : i32
    %c0_i32_83 = arith.constant 0 : i32
    %115 = arith.cmpi eq, %c128_i32_82, %c0_i32_83 : i32
    %c1_i32_84 = arith.constant 1 : i32
    %116 = arith.select %115, %c1_i32_84, %c128_i32_82 : i32
    %117 = arith.remsi %114, %116 : i32
    %c0_i32_85 = arith.constant 0 : i32
    %118 = arith.cmpi ne, %117, %c0_i32_85 : i32
    %c0_i32_86 = arith.constant 0 : i32
    %119 = arith.cmpi slt, %117, %c0_i32_86 : i32
    %c0_i32_87 = arith.constant 0 : i32
    %120 = arith.cmpi slt, %116, %c0_i32_87 : i32
    %121 = arith.xori %119, %120 : i1
    %122 = arith.andi %121, %118 : i1
    %123 = arith.addi %117, %116 : i32
    %124 = arith.select %122, %123, %117 : i32
    %c4_i32 = arith.constant 4 : i32
    %125 = arith.addi %0, %c4_i32 : i32
    %c2_i32_88 = arith.constant 2 : i32
    %126 = arith.muli %c2_i32_88, %125 : i32
    %127 = arith.index_cast %126 : i32 to index
    %128 = memref.load %arg1[%127] : memref<10xi32, #tpu.memory_space<smem>>
    %c4_i32_89 = arith.constant 4 : i32
    %129 = arith.addi %0, %c4_i32_89 : i32
    %c2_i32_90 = arith.constant 2 : i32
    %130 = arith.muli %c2_i32_90, %129 : i32
    %c1_i32_91 = arith.constant 1 : i32
    %131 = arith.addi %130, %c1_i32_91 : i32
    %132 = arith.index_cast %131 : i32 to index
    %133 = memref.load %arg1[%132] : memref<10xi32, #tpu.memory_space<smem>>
    %c0_i32_92 = arith.constant 0 : i32
    %c24_i32_93 = arith.constant 24 : i32
    %134 = arith.maxsi %c0_i32_92, %133 : i32
    %135 = arith.minsi %c24_i32_93, %134 : i32
    %136 = arith.subi %133, %135 : i32
    %c-8_i32_94 = arith.constant -8 : i32
    %c8_i32_95 = arith.constant 8 : i32
    %137 = arith.maxsi %c-8_i32_94, %136 : i32
    %138 = arith.minsi %c8_i32_95, %137 : i32
    %c4_i32_96 = arith.constant 4 : i32
    %c4_i32_97 = arith.constant 4 : i32
    %c0_i32_98 = arith.constant 0 : i32
    %c0_i32_99 = arith.constant 0 : i32
    %139 = tpu.memref_slice %arg2[%c0_i32_98, %135, %c0_i32_99] : memref<4x32x128xf32, #tpu.memory_space<any>> -> memref<4x8x128xf32, #tpu.memory_space<any>>
    %c0_i32_100 = arith.constant 0 : i32
    %c8_i32_101 = arith.constant 8 : i32
    %c0_i32_102 = arith.constant 0 : i32
    %140 = tpu.memref_slice %arg4[%c4_i32_96, %c0_i32_100, %c8_i32_101, %c0_i32_102] : memref<5x4x24x128xf32, #tpu.memory_space<vmem>> -> memref<1x4x8x128xf32, #tpu.memory_space<vmem>>
    %141 = tpu.memref_squeeze %140 : memref<1x4x8x128xf32, #tpu.memory_space<vmem>> -> memref<4x8x128xf32, #tpu.memory_space<vmem>>
    %142 = tpu.memref_slice %arg5[%c4_i32_97] : memref<5x!tpu.dma_semaphore, #tpu.memory_space<semaphore_mem>> -> memref<1x!tpu.dma_semaphore, #tpu.memory_space<semaphore_mem>>
    %143 = tpu.memref_squeeze %142 : memref<1x!tpu.dma_semaphore, #tpu.memory_space<semaphore_mem>> -> memref<!tpu.dma_semaphore, #tpu.memory_space<semaphore_mem>>
    tpu.enqueue_dma source(%139 : memref<4x8x128xf32, #tpu.memory_space<any>>) target(%141 : memref<4x8x128xf32, #tpu.memory_space<vmem>>) target_semaphore(%143 : memref<!tpu.dma_semaphore, #tpu.memory_space<semaphore_mem>>)
    %c8_i32_103 = arith.constant 8 : i32
    %144 = arith.addi %c8_i32_103, %138 : i32
    %c0_i32_104 = arith.constant 0 : i32
    %145 = arith.subi %c0_i32_104, %128 : i32
    %c128_i32_105 = arith.constant 128 : i32
    %c0_i32_106 = arith.constant 0 : i32
    %146 = arith.cmpi eq, %c128_i32_105, %c0_i32_106 : i32
    %c1_i32_107 = arith.constant 1 : i32
    %147 = arith.select %146, %c1_i32_107, %c128_i32_105 : i32
    %148 = arith.remsi %145, %147 : i32
    %c0_i32_108 = arith.constant 0 : i32
    %149 = arith.cmpi ne, %148, %c0_i32_108 : i32
    %c0_i32_109 = arith.constant 0 : i32
    %150 = arith.cmpi slt, %148, %c0_i32_109 : i32
    %c0_i32_110 = arith.constant 0 : i32
    %151 = arith.cmpi slt, %147, %c0_i32_110 : i32
    %152 = arith.xori %150, %151 : i1
    %153 = arith.andi %152, %149 : i1
    %154 = arith.addi %148, %147 : i32
    %155 = arith.select %153, %154, %148 : i32
    %156 = tpu.iota {dimensions = array<i32: 0>} : vector<8x8xi32>
    %157 = tpu.iota {dimensions = array<i32: 1>} : vector<8x8xi32>
    %158 = vector.broadcast %9 : i32 to vector<8x8xi32>
    %159 = arith.addi %156, %158 : vector<8x8xi32>
    %c0_i32_111 = arith.constant 0 : i32
    %160 = vector.broadcast %c0_i32_111 : i32 to vector<8x8xi32>
    %161 = arith.cmpi sge, %159, %160 : vector<8x8xi32>
    %162 = vector.broadcast %9 : i32 to vector<8x8xi32>
    %163 = arith.addi %156, %162 : vector<8x8xi32>
    %c32_i32 = arith.constant 32 : i32
    %164 = vector.broadcast %c32_i32 : i32 to vector<8x8xi32>
    %165 = arith.cmpi slt, %163, %164 : vector<8x8xi32>
    %166 = arith.andi %161, %165 : vector<8x8xi1>
    %167 = vector.broadcast %4 : i32 to vector<8x8xi32>
    %168 = arith.addi %157, %167 : vector<8x8xi32>
    %c0_i32_112 = arith.constant 0 : i32
    %169 = vector.broadcast %c0_i32_112 : i32 to vector<8x8xi32>
    %170 = arith.cmpi sge, %168, %169 : vector<8x8xi32>
    %171 = arith.andi %166, %170 : vector<8x8xi1>
    %172 = vector.broadcast %4 : i32 to vector<8x8xi32>
    %173 = arith.addi %157, %172 : vector<8x8xi32>
    %c128_i32_113 = arith.constant 128 : i32
    %174 = vector.broadcast %c128_i32_113 : i32 to vector<8x8xi32>
    %175 = arith.cmpi slt, %173, %174 : vector<8x8xi32>
    %176 = arith.andi %171, %175 : vector<8x8xi1>
    %c0_i32_114 = arith.constant 0 : i32
    %c0_i32_115 = arith.constant 0 : i32
    %c0_i32_116 = arith.constant 0 : i32
    %c0_i32_117 = arith.constant 0 : i32
    %177 = tpu.memref_slice %arg2[%c0_i32_116, %11, %c0_i32_117] : memref<4x32x128xf32, #tpu.memory_space<any>> -> memref<4x8x128xf32, #tpu.memory_space<any>>
    %c0_i32_118 = arith.constant 0 : i32
    %c8_i32_119 = arith.constant 8 : i32
    %c0_i32_120 = arith.constant 0 : i32
    %178 = tpu.memref_slice %arg4[%c0_i32_114, %c0_i32_118, %c8_i32_119, %c0_i32_120] : memref<5x4x24x128xf32, #tpu.memory_space<vmem>> -> memref<1x4x8x128xf32, #tpu.memory_space<vmem>>
    %179 = tpu.memref_squeeze %178 : memref<1x4x8x128xf32, #tpu.memory_space<vmem>> -> memref<4x8x128xf32, #tpu.memory_space<vmem>>
    %180 = tpu.memref_slice %arg5[%c0_i32_115] : memref<5x!tpu.dma_semaphore, #tpu.memory_space<semaphore_mem>> -> memref<1x!tpu.dma_semaphore, #tpu.memory_space<semaphore_mem>>
    %181 = tpu.memref_squeeze %180 : memref<1x!tpu.dma_semaphore, #tpu.memory_space<semaphore_mem>> -> memref<!tpu.dma_semaphore, #tpu.memory_space<semaphore_mem>>
    tpu.wait_dma2 semaphore(%181 : memref<!tpu.dma_semaphore, #tpu.memory_space<semaphore_mem>>) src(%177 : memref<4x8x128xf32, #tpu.memory_space<any>>) dst(%179 : memref<4x8x128xf32, #tpu.memory_space<vmem>>)
    %c0 = arith.constant 0 : index
    %c0_121 = arith.constant 0 : index
    %182 = arith.index_cast %20 : i32 to index
    %c0_122 = arith.constant 0 : index
    %183 = vector.load %arg4[%c0, %c0_121, %182, %c0_122] : memref<5x4x24x128xf32, #tpu.memory_space<vmem>>, vector<1x1x8x128xf32>
    %184 = vector.shape_cast %183 : vector<1x1x8x128xf32> to vector<8x128xf32>
    %185 = tpu.dynamic_rotate %184 by %31 dim 1 : vector<8x128xf32>, i32 -> vector<8x128xf32>
    %186 = vector.extract_strided_slice %185 {offsets = [0, 0], sizes = [8, 8], strides = [1, 1]} : vector<8x128xf32> to vector<8x8xf32>
    %cst = arith.constant 0.000000e+00 : f32
    %187 = vector.broadcast %cst : f32 to vector<8x8xf32>
    %188 = arith.select %176, %186, %187 : vector<8x8xi1>, vector<8x8xf32>
    %c0_123 = arith.constant 0 : index
    %c0_124 = arith.constant 0 : index
    %c0_125 = arith.constant 0 : index
    %c0_126 = arith.constant 0 : index
    %189 = vector.load %arg3[%c0_123, %c0_124, %c0_125, %c0_126] : memref<1x4x8x40xf32, #tpu.memory_space<vmem>>, vector<1x1x8x8xf32>
    %190 = vector.shape_cast %189 : vector<1x1x8x8xf32> to vector<8x8xf32>
    %191 = vector.shape_cast %188 : vector<8x8xf32> to vector<1x1x8x8xf32>
    tpu.vector_store %arg3[%c0_123, %c0_124, %c0_125, %c0_126], %191 {strides = array<i32>} : memref<1x4x8x40xf32, #tpu.memory_space<vmem>>, vector<1x1x8x8xf32>,
    %c0_127 = arith.constant 0 : index
    %c1 = arith.constant 1 : index
    %192 = arith.index_cast %20 : i32 to index
    %c0_128 = arith.constant 0 : index
    %193 = vector.load %arg4[%c0_127, %c1, %192, %c0_128] : memref<5x4x24x128xf32, #tpu.memory_space<vmem>>, vector<1x1x8x128xf32>
    %194 = vector.shape_cast %193 : vector<1x1x8x128xf32> to vector<8x128xf32>
    %195 = tpu.dynamic_rotate %194 by %31 dim 1 : vector<8x128xf32>, i32 -> vector<8x128xf32>
    %196 = vector.extract_strided_slice %195 {offsets = [0, 0], sizes = [8, 8], strides = [1, 1]} : vector<8x128xf32> to vector<8x8xf32>
    %cst_129 = arith.constant 0.000000e+00 : f32
    %197 = vector.broadcast %cst_129 : f32 to vector<8x8xf32>
    %198 = arith.select %176, %196, %197 : vector<8x8xi1>, vector<8x8xf32>
    %c0_130 = arith.constant 0 : index
    %c1_131 = arith.constant 1 : index
    %c0_132 = arith.constant 0 : index
    %c0_133 = arith.constant 0 : index
    %199 = vector.load %arg3[%c0_130, %c1_131, %c0_132, %c0_133] : memref<1x4x8x40xf32, #tpu.memory_space<vmem>>, vector<1x1x8x8xf32>
    %200 = vector.shape_cast %199 : vector<1x1x8x8xf32> to vector<8x8xf32>
    %201 = vector.shape_cast %198 : vector<8x8xf32> to vector<1x1x8x8xf32>
    tpu.vector_store %arg3[%c0_130, %c1_131, %c0_132, %c0_133], %201 {strides = array<i32>} : memref<1x4x8x40xf32, #tpu.memory_space<vmem>>, vector<1x1x8x8xf32>,
    %c0_134 = arith.constant 0 : index
    %c2 = arith.constant 2 : index
    %202 = arith.index_cast %20 : i32 to index
    %c0_135 = arith.constant 0 : index
    %203 = vector.load %arg4[%c0_134, %c2, %202, %c0_135] : memref<5x4x24x128xf32, #tpu.memory_space<vmem>>, vector<1x1x8x128xf32>
    %204 = vector.shape_cast %203 : vector<1x1x8x128xf32> to vector<8x128xf32>
    %205 = tpu.dynamic_rotate %204 by %31 dim 1 : vector<8x128xf32>, i32 -> vector<8x128xf32>
    %206 = vector.extract_strided_slice %205 {offsets = [0, 0], sizes = [8, 8], strides = [1, 1]} : vector<8x128xf32> to vector<8x8xf32>
    %cst_136 = arith.constant 0.000000e+00 : f32
    %207 = vector.broadcast %cst_136 : f32 to vector<8x8xf32>
    %208 = arith.select %176, %206, %207 : vector<8x8xi1>, vector<8x8xf32>
    %c0_137 = arith.constant 0 : index
    %c2_138 = arith.constant 2 : index
    %c0_139 = arith.constant 0 : index
    %c0_140 = arith.constant 0 : index
    %209 = vector.load %arg3[%c0_137, %c2_138, %c0_139, %c0_140] : memref<1x4x8x40xf32, #tpu.memory_space<vmem>>, vector<1x1x8x8xf32>
    %210 = vector.shape_cast %209 : vector<1x1x8x8xf32> to vector<8x8xf32>
    %211 = vector.shape_cast %208 : vector<8x8xf32> to vector<1x1x8x8xf32>
    tpu.vector_store %arg3[%c0_137, %c2_138, %c0_139, %c0_140], %211 {strides = array<i32>} : memref<1x4x8x40xf32, #tpu.memory_space<vmem>>, vector<1x1x8x8xf32>,
    %c0_141 = arith.constant 0 : index
    %c3 = arith.constant 3 : index
    %212 = arith.index_cast %20 : i32 to index
    %c0_142 = arith.constant 0 : index
    %213 = vector.load %arg4[%c0_141, %c3, %212, %c0_142] : memref<5x4x24x128xf32, #tpu.memory_space<vmem>>, vector<1x1x8x128xf32>
    %214 = vector.shape_cast %213 : vector<1x1x8x128xf32> to vector<8x128xf32>
    %215 = tpu.dynamic_rotate %214 by %31 dim 1 : vector<8x128xf32>, i32 -> vector<8x128xf32>
    %216 = vector.extract_strided_slice %215 {offsets = [0, 0], sizes = [8, 8], strides = [1, 1]} : vector<8x128xf32> to vector<8x8xf32>
    %cst_143 = arith.constant 0.000000e+00 : f32
    %217 = vector.broadcast %cst_143 : f32 to vector<8x8xf32>
    %218 = arith.select %176, %216, %217 : vector<8x8xi1>, vector<8x8xf32>
    %c0_144 = arith.constant 0 : index
    %c3_145 = arith.constant 3 : index
    %c0_146 = arith.constant 0 : index
    %c0_147 = arith.constant 0 : index
    %219 = vector.load %arg3[%c0_144, %c3_145, %c0_146, %c0_147] : memref<1x4x8x40xf32, #tpu.memory_space<vmem>>, vector<1x1x8x8xf32>
    %220 = vector.shape_cast %219 : vector<1x1x8x8xf32> to vector<8x8xf32>
    %221 = vector.shape_cast %218 : vector<8x8xf32> to vector<1x1x8x8xf32>
    tpu.vector_store %arg3[%c0_144, %c3_145, %c0_146, %c0_147], %221 {strides = array<i32>} : memref<1x4x8x40xf32, #tpu.memory_space<vmem>>, vector<1x1x8x8xf32>,
    %222 = vector.broadcast %40 : i32 to vector<8x8xi32>
    %223 = arith.addi %156, %222 : vector<8x8xi32>
    %c0_i32_148 = arith.constant 0 : i32
    %224 = vector.broadcast %c0_i32_148 : i32 to vector<8x8xi32>
    %225 = arith.cmpi sge, %223, %224 : vector<8x8xi32>
    %226 = vector.broadcast %40 : i32 to vector<8x8xi32>
    %227 = arith.addi %156, %226 : vector<8x8xi32>
    %c32_i32_149 = arith.constant 32 : i32
    %228 = vector.broadcast %c32_i32_149 : i32 to vector<8x8xi32>
    %229 = arith.cmpi slt, %227, %228 : vector<8x8xi32>
    %230 = arith.andi %225, %229 : vector<8x8xi1>
    %231 = vector.broadcast %35 : i32 to vector<8x8xi32>
    %232 = arith.addi %157, %231 : vector<8x8xi32>
    %c0_i32_150 = arith.constant 0 : i32
    %233 = vector.broadcast %c0_i32_150 : i32 to vector<8x8xi32>
    %234 = arith.cmpi sge, %232, %233 : vector<8x8xi32>
    %235 = arith.andi %230, %234 : vector<8x8xi1>
    %236 = vector.broadcast %35 : i32 to vector<8x8xi32>
    %237 = arith.addi %157, %236 : vector<8x8xi32>
    %c128_i32_151 = arith.constant 128 : i32
    %238 = vector.broadcast %c128_i32_151 : i32 to vector<8x8xi32>
    %239 = arith.cmpi slt, %237, %238 : vector<8x8xi32>
    %240 = arith.andi %235, %239 : vector<8x8xi1>
    %c1_i32_152 = arith.constant 1 : i32
    %c1_i32_153 = arith.constant 1 : i32
    %c0_i32_154 = arith.constant 0 : i32
    %c0_i32_155 = arith.constant 0 : i32
    %241 = tpu.memref_slice %arg2[%c0_i32_154, %42, %c0_i32_155] : memref<4x32x128xf32, #tpu.memory_space<any>> -> memref<4x8x128xf32, #tpu.memory_space<any>>
    %c0_i32_156 = arith.constant 0 : i32
    %c8_i32_157 = arith.constant 8 : i32
    %c0_i32_158 = arith.constant 0 : i32
    %242 = tpu.memref_slice %arg4[%c1_i32_152, %c0_i32_156, %c8_i32_157, %c0_i32_158] : memref<5x4x24x128xf32, #tpu.memory_space<vmem>> -> memref<1x4x8x128xf32, #tpu.memory_space<vmem>>
    %243 = tpu.memref_squeeze %242 : memref<1x4x8x128xf32, #tpu.memory_space<vmem>> -> memref<4x8x128xf32, #tpu.memory_space<vmem>>
    %244 = tpu.memref_slice %arg5[%c1_i32_153] : memref<5x!tpu.dma_semaphore, #tpu.memory_space<semaphore_mem>> -> memref<1x!tpu.dma_semaphore, #tpu.memory_space<semaphore_mem>>
    %245 = tpu.memref_squeeze %244 : memref<1x!tpu.dma_semaphore, #tpu.memory_space<semaphore_mem>> -> memref<!tpu.dma_semaphore, #tpu.memory_space<semaphore_mem>>
    tpu.wait_dma2 semaphore(%245 : memref<!tpu.dma_semaphore, #tpu.memory_space<semaphore_mem>>) src(%241 : memref<4x8x128xf32, #tpu.memory_space<any>>) dst(%243 : memref<4x8x128xf32, #tpu.memory_space<vmem>>)
    %c1_159 = arith.constant 1 : index
    %c0_160 = arith.constant 0 : index
    %246 = arith.index_cast %51 : i32 to index
    %c0_161 = arith.constant 0 : index
    %247 = vector.load %arg4[%c1_159, %c0_160, %246, %c0_161] : memref<5x4x24x128xf32, #tpu.memory_space<vmem>>, vector<1x1x8x128xf32>
    %248 = vector.shape_cast %247 : vector<1x1x8x128xf32> to vector<8x128xf32>
    %249 = tpu.dynamic_rotate %248 by %62 dim 1 : vector<8x128xf32>, i32 -> vector<8x128xf32>
    %250 = vector.extract_strided_slice %249 {offsets = [0, 0], sizes = [8, 8], strides = [1, 1]} : vector<8x128xf32> to vector<8x8xf32>
    %cst_162 = arith.constant 0.000000e+00 : f32
    %251 = vector.broadcast %cst_162 : f32 to vector<8x8xf32>
    %252 = arith.select %240, %250, %251 : vector<8x8xi1>, vector<8x8xf32>
    %c0_163 = arith.constant 0 : index
    %c0_164 = arith.constant 0 : index
    %c0_165 = arith.constant 0 : index
    %c8 = arith.constant 8 : index
    %253 = vector.load %arg3[%c0_163, %c0_164, %c0_165, %c8] : memref<1x4x8x40xf32, #tpu.memory_space<vmem>>, vector<1x1x8x8xf32>
    %254 = vector.shape_cast %253 : vector<1x1x8x8xf32> to vector<8x8xf32>
    %255 = vector.shape_cast %252 : vector<8x8xf32> to vector<1x1x8x8xf32>
    tpu.vector_store %arg3[%c0_163, %c0_164, %c0_165, %c8], %255 {strides = array<i32>} : memref<1x4x8x40xf32, #tpu.memory_space<vmem>>, vector<1x1x8x8xf32>,
    %c1_166 = arith.constant 1 : index
    %c1_167 = arith.constant 1 : index
    %256 = arith.index_cast %51 : i32 to index
    %c0_168 = arith.constant 0 : index
    %257 = vector.load %arg4[%c1_166, %c1_167, %256, %c0_168] : memref<5x4x24x128xf32, #tpu.memory_space<vmem>>, vector<1x1x8x128xf32>
    %258 = vector.shape_cast %257 : vector<1x1x8x128xf32> to vector<8x128xf32>
    %259 = tpu.dynamic_rotate %258 by %62 dim 1 : vector<8x128xf32>, i32 -> vector<8x128xf32>
    %260 = vector.extract_strided_slice %259 {offsets = [0, 0], sizes = [8, 8], strides = [1, 1]} : vector<8x128xf32> to vector<8x8xf32>
    %cst_169 = arith.constant 0.000000e+00 : f32
    %261 = vector.broadcast %cst_169 : f32 to vector<8x8xf32>
    %262 = arith.select %240, %260, %261 : vector<8x8xi1>, vector<8x8xf32>
    %c0_170 = arith.constant 0 : index
    %c1_171 = arith.constant 1 : index
    %c0_172 = arith.constant 0 : index
    %c8_173 = arith.constant 8 : index
    %263 = vector.load %arg3[%c0_170, %c1_171, %c0_172, %c8_173] : memref<1x4x8x40xf32, #tpu.memory_space<vmem>>, vector<1x1x8x8xf32>
    %264 = vector.shape_cast %263 : vector<1x1x8x8xf32> to vector<8x8xf32>
    %265 = vector.shape_cast %262 : vector<8x8xf32> to vector<1x1x8x8xf32>
    tpu.vector_store %arg3[%c0_170, %c1_171, %c0_172, %c8_173], %265 {strides = array<i32>} : memref<1x4x8x40xf32, #tpu.memory_space<vmem>>, vector<1x1x8x8xf32>,
    %c1_174 = arith.constant 1 : index
    %c2_175 = arith.constant 2 : index
    %266 = arith.index_cast %51 : i32 to index
    %c0_176 = arith.constant 0 : index
    %267 = vector.load %arg4[%c1_174, %c2_175, %266, %c0_176] : memref<5x4x24x128xf32, #tpu.memory_space<vmem>>, vector<1x1x8x128xf32>
    %268 = vector.shape_cast %267 : vector<1x1x8x128xf32> to vector<8x128xf32>
    %269 = tpu.dynamic_rotate %268 by %62 dim 1 : vector<8x128xf32>, i32 -> vector<8x128xf32>
    %270 = vector.extract_strided_slice %269 {offsets = [0, 0], sizes = [8, 8], strides = [1, 1]} : vector<8x128xf32> to vector<8x8xf32>
    %cst_177 = arith.constant 0.000000e+00 : f32
    %271 = vector.broadcast %cst_177 : f32 to vector<8x8xf32>
    %272 = arith.select %240, %270, %271 : vector<8x8xi1>, vector<8x8xf32>
    %c0_178 = arith.constant 0 : index
    %c2_179 = arith.constant 2 : index
    %c0_180 = arith.constant 0 : index
    %c8_181 = arith.constant 8 : index
    %273 = vector.load %arg3[%c0_178, %c2_179, %c0_180, %c8_181] : memref<1x4x8x40xf32, #tpu.memory_space<vmem>>, vector<1x1x8x8xf32>
    %274 = vector.shape_cast %273 : vector<1x1x8x8xf32> to vector<8x8xf32>
    %275 = vector.shape_cast %272 : vector<8x8xf32> to vector<1x1x8x8xf32>
    tpu.vector_store %arg3[%c0_178, %c2_179, %c0_180, %c8_181], %275 {strides = array<i32>} : memref<1x4x8x40xf32, #tpu.memory_space<vmem>>, vector<1x1x8x8xf32>,
    %c1_182 = arith.constant 1 : index
    %c3_183 = arith.constant 3 : index
    %276 = arith.index_cast %51 : i32 to index
    %c0_184 = arith.constant 0 : index
    %277 = vector.load %arg4[%c1_182, %c3_183, %276, %c0_184] : memref<5x4x24x128xf32, #tpu.memory_space<vmem>>, vector<1x1x8x128xf32>
    %278 = vector.shape_cast %277 : vector<1x1x8x128xf32> to vector<8x128xf32>
    %279 = tpu.dynamic_rotate %278 by %62 dim 1 : vector<8x128xf32>, i32 -> vector<8x128xf32>
    %280 = vector.extract_strided_slice %279 {offsets = [0, 0], sizes = [8, 8], strides = [1, 1]} : vector<8x128xf32> to vector<8x8xf32>
    %cst_185 = arith.constant 0.000000e+00 : f32
    %281 = vector.broadcast %cst_185 : f32 to vector<8x8xf32>
    %282 = arith.select %240, %280, %281 : vector<8x8xi1>, vector<8x8xf32>
    %c0_186 = arith.constant 0 : index
    %c3_187 = arith.constant 3 : index
    %c0_188 = arith.constant 0 : index
    %c8_189 = arith.constant 8 : index
    %283 = vector.load %arg3[%c0_186, %c3_187, %c0_188, %c8_189] : memref<1x4x8x40xf32, #tpu.memory_space<vmem>>, vector<1x1x8x8xf32>
    %284 = vector.shape_cast %283 : vector<1x1x8x8xf32> to vector<8x8xf32>
    %285 = vector.shape_cast %282 : vector<8x8xf32> to vector<1x1x8x8xf32>
    tpu.vector_store %arg3[%c0_186, %c3_187, %c0_188, %c8_189], %285 {strides = array<i32>} : memref<1x4x8x40xf32, #tpu.memory_space<vmem>>, vector<1x1x8x8xf32>,
    %286 = vector.broadcast %71 : i32 to vector<8x8xi32>
    %287 = arith.addi %156, %286 : vector<8x8xi32>
    %c0_i32_190 = arith.constant 0 : i32
    %288 = vector.broadcast %c0_i32_190 : i32 to vector<8x8xi32>
    %289 = arith.cmpi sge, %287, %288 : vector<8x8xi32>
    %290 = vector.broadcast %71 : i32 to vector<8x8xi32>
    %291 = arith.addi %156, %290 : vector<8x8xi32>
    %c32_i32_191 = arith.constant 32 : i32
    %292 = vector.broadcast %c32_i32_191 : i32 to vector<8x8xi32>
    %293 = arith.cmpi slt, %291, %292 : vector<8x8xi32>
    %294 = arith.andi %289, %293 : vector<8x8xi1>
    %295 = vector.broadcast %66 : i32 to vector<8x8xi32>
    %296 = arith.addi %157, %295 : vector<8x8xi32>
    %c0_i32_192 = arith.constant 0 : i32
    %297 = vector.broadcast %c0_i32_192 : i32 to vector<8x8xi32>
    %298 = arith.cmpi sge, %296, %297 : vector<8x8xi32>
    %299 = arith.andi %294, %298 : vector<8x8xi1>
    %300 = vector.broadcast %66 : i32 to vector<8x8xi32>
    %301 = arith.addi %157, %300 : vector<8x8xi32>
    %c128_i32_193 = arith.constant 128 : i32
    %302 = vector.broadcast %c128_i32_193 : i32 to vector<8x8xi32>
    %303 = arith.cmpi slt, %301, %302 : vector<8x8xi32>
    %304 = arith.andi %299, %303 : vector<8x8xi1>
    %c2_i32_194 = arith.constant 2 : i32
    %c2_i32_195 = arith.constant 2 : i32
    %c0_i32_196 = arith.constant 0 : i32
    %c0_i32_197 = arith.constant 0 : i32
    %305 = tpu.memref_slice %arg2[%c0_i32_196, %73, %c0_i32_197] : memref<4x32x128xf32, #tpu.memory_space<any>> -> memref<4x8x128xf32, #tpu.memory_space<any>>
    %c0_i32_198 = arith.constant 0 : i32
    %c8_i32_199 = arith.constant 8 : i32
    %c0_i32_200 = arith.constant 0 : i32
    %306 = tpu.memref_slice %arg4[%c2_i32_194, %c0_i32_198, %c8_i32_199, %c0_i32_200] : memref<5x4x24x128xf32, #tpu.memory_space<vmem>> -> memref<1x4x8x128xf32, #tpu.memory_space<vmem>>
    %307 = tpu.memref_squeeze %306 : memref<1x4x8x128xf32, #tpu.memory_space<vmem>> -> memref<4x8x128xf32, #tpu.memory_space<vmem>>
    %308 = tpu.memref_slice %arg5[%c2_i32_195] : memref<5x!tpu.dma_semaphore, #tpu.memory_space<semaphore_mem>> -> memref<1x!tpu.dma_semaphore, #tpu.memory_space<semaphore_mem>>
    %309 = tpu.memref_squeeze %308 : memref<1x!tpu.dma_semaphore, #tpu.memory_space<semaphore_mem>> -> memref<!tpu.dma_semaphore, #tpu.memory_space<semaphore_mem>>
    tpu.wait_dma2 semaphore(%309 : memref<!tpu.dma_semaphore, #tpu.memory_space<semaphore_mem>>) src(%305 : memref<4x8x128xf32, #tpu.memory_space<any>>) dst(%307 : memref<4x8x128xf32, #tpu.memory_space<vmem>>)
    %c2_201 = arith.constant 2 : index
    %c0_202 = arith.constant 0 : index
    %310 = arith.index_cast %82 : i32 to index
    %c0_203 = arith.constant 0 : index
    %311 = vector.load %arg4[%c2_201, %c0_202, %310, %c0_203] : memref<5x4x24x128xf32, #tpu.memory_space<vmem>>, vector<1x1x8x128xf32>
    %312 = vector.shape_cast %311 : vector<1x1x8x128xf32> to vector<8x128xf32>
    %313 = tpu.dynamic_rotate %312 by %93 dim 1 : vector<8x128xf32>, i32 -> vector<8x128xf32>
    %314 = vector.extract_strided_slice %313 {offsets = [0, 0], sizes = [8, 8], strides = [1, 1]} : vector<8x128xf32> to vector<8x8xf32>
    %cst_204 = arith.constant 0.000000e+00 : f32
    %315 = vector.broadcast %cst_204 : f32 to vector<8x8xf32>
    %316 = arith.select %304, %314, %315 : vector<8x8xi1>, vector<8x8xf32>
    %c0_205 = arith.constant 0 : index
    %c0_206 = arith.constant 0 : index
    %c0_207 = arith.constant 0 : index
    %c16 = arith.constant 16 : index
    %317 = vector.load %arg3[%c0_205, %c0_206, %c0_207, %c16] : memref<1x4x8x40xf32, #tpu.memory_space<vmem>>, vector<1x1x8x8xf32>
    %318 = vector.shape_cast %317 : vector<1x1x8x8xf32> to vector<8x8xf32>
    %319 = vector.shape_cast %316 : vector<8x8xf32> to vector<1x1x8x8xf32>
    tpu.vector_store %arg3[%c0_205, %c0_206, %c0_207, %c16], %319 {strides = array<i32>} : memref<1x4x8x40xf32, #tpu.memory_space<vmem>>, vector<1x1x8x8xf32>,
    %c2_208 = arith.constant 2 : index
    %c1_209 = arith.constant 1 : index
    %320 = arith.index_cast %82 : i32 to index
    %c0_210 = arith.constant 0 : index
    %321 = vector.load %arg4[%c2_208, %c1_209, %320, %c0_210] : memref<5x4x24x128xf32, #tpu.memory_space<vmem>>, vector<1x1x8x128xf32>
    %322 = vector.shape_cast %321 : vector<1x1x8x128xf32> to vector<8x128xf32>
    %323 = tpu.dynamic_rotate %322 by %93 dim 1 : vector<8x128xf32>, i32 -> vector<8x128xf32>
    %324 = vector.extract_strided_slice %323 {offsets = [0, 0], sizes = [8, 8], strides = [1, 1]} : vector<8x128xf32> to vector<8x8xf32>
    %cst_211 = arith.constant 0.000000e+00 : f32
    %325 = vector.broadcast %cst_211 : f32 to vector<8x8xf32>
    %326 = arith.select %304, %324, %325 : vector<8x8xi1>, vector<8x8xf32>
    %c0_212 = arith.constant 0 : index
    %c1_213 = arith.constant 1 : index
    %c0_214 = arith.constant 0 : index
    %c16_215 = arith.constant 16 : index
    %327 = vector.load %arg3[%c0_212, %c1_213, %c0_214, %c16_215] : memref<1x4x8x40xf32, #tpu.memory_space<vmem>>, vector<1x1x8x8xf32>
    %328 = vector.shape_cast %327 : vector<1x1x8x8xf32> to vector<8x8xf32>
    %329 = vector.shape_cast %326 : vector<8x8xf32> to vector<1x1x8x8xf32>
    tpu.vector_store %arg3[%c0_212, %c1_213, %c0_214, %c16_215], %329 {strides = array<i32>} : memref<1x4x8x40xf32, #tpu.memory_space<vmem>>, vector<1x1x8x8xf32>,
    %c2_216 = arith.constant 2 : index
    %c2_217 = arith.constant 2 : index
    %330 = arith.index_cast %82 : i32 to index
    %c0_218 = arith.constant 0 : index
    %331 = vector.load %arg4[%c2_216, %c2_217, %330, %c0_218] : memref<5x4x24x128xf32, #tpu.memory_space<vmem>>, vector<1x1x8x128xf32>
    %332 = vector.shape_cast %331 : vector<1x1x8x128xf32> to vector<8x128xf32>
    %333 = tpu.dynamic_rotate %332 by %93 dim 1 : vector<8x128xf32>, i32 -> vector<8x128xf32>
    %334 = vector.extract_strided_slice %333 {offsets = [0, 0], sizes = [8, 8], strides = [1, 1]} : vector<8x128xf32> to vector<8x8xf32>
    %cst_219 = arith.constant 0.000000e+00 : f32
    %335 = vector.broadcast %cst_219 : f32 to vector<8x8xf32>
    %336 = arith.select %304, %334, %335 : vector<8x8xi1>, vector<8x8xf32>
    %c0_220 = arith.constant 0 : index
    %c2_221 = arith.constant 2 : index
    %c0_222 = arith.constant 0 : index
    %c16_223 = arith.constant 16 : index
    %337 = vector.load %arg3[%c0_220, %c2_221, %c0_222, %c16_223] : memref<1x4x8x40xf32, #tpu.memory_space<vmem>>, vector<1x1x8x8xf32>
    %338 = vector.shape_cast %337 : vector<1x1x8x8xf32> to vector<8x8xf32>
    %339 = vector.shape_cast %336 : vector<8x8xf32> to vector<1x1x8x8xf32>
    tpu.vector_store %arg3[%c0_220, %c2_221, %c0_222, %c16_223], %339 {strides = array<i32>} : memref<1x4x8x40xf32, #tpu.memory_space<vmem>>, vector<1x1x8x8xf32>,
    %c2_224 = arith.constant 2 : index
    %c3_225 = arith.constant 3 : index
    %340 = arith.index_cast %82 : i32 to index
    %c0_226 = arith.constant 0 : index
    %341 = vector.load %arg4[%c2_224, %c3_225, %340, %c0_226] : memref<5x4x24x128xf32, #tpu.memory_space<vmem>>, vector<1x1x8x128xf32>
    %342 = vector.shape_cast %341 : vector<1x1x8x128xf32> to vector<8x128xf32>
    %343 = tpu.dynamic_rotate %342 by %93 dim 1 : vector<8x128xf32>, i32 -> vector<8x128xf32>
    %344 = vector.extract_strided_slice %343 {offsets = [0, 0], sizes = [8, 8], strides = [1, 1]} : vector<8x128xf32> to vector<8x8xf32>
    %cst_227 = arith.constant 0.000000e+00 : f32
    %345 = vector.broadcast %cst_227 : f32 to vector<8x8xf32>
    %346 = arith.select %304, %344, %345 : vector<8x8xi1>, vector<8x8xf32>
    %c0_228 = arith.constant 0 : index
    %c3_229 = arith.constant 3 : index
    %c0_230 = arith.constant 0 : index
    %c16_231 = arith.constant 16 : index
    %347 = vector.load %arg3[%c0_228, %c3_229, %c0_230, %c16_231] : memref<1x4x8x40xf32, #tpu.memory_space<vmem>>, vector<1x1x8x8xf32>
    %348 = vector.shape_cast %347 : vector<1x1x8x8xf32> to vector<8x8xf32>
    %349 = vector.shape_cast %346 : vector<8x8xf32> to vector<1x1x8x8xf32>
    tpu.vector_store %arg3[%c0_228, %c3_229, %c0_230, %c16_231], %349 {strides = array<i32>} : memref<1x4x8x40xf32, #tpu.memory_space<vmem>>, vector<1x1x8x8xf32>,
    %350 = vector.broadcast %102 : i32 to vector<8x8xi32>
    %351 = arith.addi %156, %350 : vector<8x8xi32>
    %c0_i32_232 = arith.constant 0 : i32
    %352 = vector.broadcast %c0_i32_232 : i32 to vector<8x8xi32>
    %353 = arith.cmpi sge, %351, %352 : vector<8x8xi32>
    %354 = vector.broadcast %102 : i32 to vector<8x8xi32>
    %355 = arith.addi %156, %354 : vector<8x8xi32>
    %c32_i32_233 = arith.constant 32 : i32
    %356 = vector.broadcast %c32_i32_233 : i32 to vector<8x8xi32>
    %357 = arith.cmpi slt, %355, %356 : vector<8x8xi32>
    %358 = arith.andi %353, %357 : vector<8x8xi1>
    %359 = vector.broadcast %97 : i32 to vector<8x8xi32>
    %360 = arith.addi %157, %359 : vector<8x8xi32>
    %c0_i32_234 = arith.constant 0 : i32
    %361 = vector.broadcast %c0_i32_234 : i32 to vector<8x8xi32>
    %362 = arith.cmpi sge, %360, %361 : vector<8x8xi32>
    %363 = arith.andi %358, %362 : vector<8x8xi1>
    %364 = vector.broadcast %97 : i32 to vector<8x8xi32>
    %365 = arith.addi %157, %364 : vector<8x8xi32>
    %c128_i32_235 = arith.constant 128 : i32
    %366 = vector.broadcast %c128_i32_235 : i32 to vector<8x8xi32>
    %367 = arith.cmpi slt, %365, %366 : vector<8x8xi32>
    %368 = arith.andi %363, %367 : vector<8x8xi1>
    %c3_i32_236 = arith.constant 3 : i32
    %c3_i32_237 = arith.constant 3 : i32
    %c0_i32_238 = arith.constant 0 : i32
    %c0_i32_239 = arith.constant 0 : i32
    %369 = tpu.memref_slice %arg2[%c0_i32_238, %104, %c0_i32_239] : memref<4x32x128xf32, #tpu.memory_space<any>> -> memref<4x8x128xf32, #tpu.memory_space<any>>
    %c0_i32_240 = arith.constant 0 : i32
    %c8_i32_241 = arith.constant 8 : i32
    %c0_i32_242 = arith.constant 0 : i32
    %370 = tpu.memref_slice %arg4[%c3_i32_236, %c0_i32_240, %c8_i32_241, %c0_i32_242] : memref<5x4x24x128xf32, #tpu.memory_space<vmem>> -> memref<1x4x8x128xf32, #tpu.memory_space<vmem>>
    %371 = tpu.memref_squeeze %370 : memref<1x4x8x128xf32, #tpu.memory_space<vmem>> -> memref<4x8x128xf32, #tpu.memory_space<vmem>>
    %372 = tpu.memref_slice %arg5[%c3_i32_237] : memref<5x!tpu.dma_semaphore, #tpu.memory_space<semaphore_mem>> -> memref<1x!tpu.dma_semaphore, #tpu.memory_space<semaphore_mem>>
    %373 = tpu.memref_squeeze %372 : memref<1x!tpu.dma_semaphore, #tpu.memory_space<semaphore_mem>> -> memref<!tpu.dma_semaphore, #tpu.memory_space<semaphore_mem>>
    tpu.wait_dma2 semaphore(%373 : memref<!tpu.dma_semaphore, #tpu.memory_space<semaphore_mem>>) src(%369 : memref<4x8x128xf32, #tpu.memory_space<any>>) dst(%371 : memref<4x8x128xf32, #tpu.memory_space<vmem>>)
    %c3_243 = arith.constant 3 : index
    %c0_244 = arith.constant 0 : index
    %374 = arith.index_cast %113 : i32 to index
    %c0_245 = arith.constant 0 : index
    %375 = vector.load %arg4[%c3_243, %c0_244, %374, %c0_245] : memref<5x4x24x128xf32, #tpu.memory_space<vmem>>, vector<1x1x8x128xf32>
    %376 = vector.shape_cast %375 : vector<1x1x8x128xf32> to vector<8x128xf32>
    %377 = tpu.dynamic_rotate %376 by %124 dim 1 : vector<8x128xf32>, i32 -> vector<8x128xf32>
    %378 = vector.extract_strided_slice %377 {offsets = [0, 0], sizes = [8, 8], strides = [1, 1]} : vector<8x128xf32> to vector<8x8xf32>
    %cst_246 = arith.constant 0.000000e+00 : f32
    %379 = vector.broadcast %cst_246 : f32 to vector<8x8xf32>
    %380 = arith.select %368, %378, %379 : vector<8x8xi1>, vector<8x8xf32>
    %c0_247 = arith.constant 0 : index
    %c0_248 = arith.constant 0 : index
    %c0_249 = arith.constant 0 : index
    %c24 = arith.constant 24 : index
    %381 = vector.load %arg3[%c0_247, %c0_248, %c0_249, %c24] : memref<1x4x8x40xf32, #tpu.memory_space<vmem>>, vector<1x1x8x8xf32>
    %382 = vector.shape_cast %381 : vector<1x1x8x8xf32> to vector<8x8xf32>
    %383 = vector.shape_cast %380 : vector<8x8xf32> to vector<1x1x8x8xf32>
    tpu.vector_store %arg3[%c0_247, %c0_248, %c0_249, %c24], %383 {strides = array<i32>} : memref<1x4x8x40xf32, #tpu.memory_space<vmem>>, vector<1x1x8x8xf32>,
    %c3_250 = arith.constant 3 : index
    %c1_251 = arith.constant 1 : index
    %384 = arith.index_cast %113 : i32 to index
    %c0_252 = arith.constant 0 : index
    %385 = vector.load %arg4[%c3_250, %c1_251, %384, %c0_252] : memref<5x4x24x128xf32, #tpu.memory_space<vmem>>, vector<1x1x8x128xf32>
    %386 = vector.shape_cast %385 : vector<1x1x8x128xf32> to vector<8x128xf32>
    %387 = tpu.dynamic_rotate %386 by %124 dim 1 : vector<8x128xf32>, i32 -> vector<8x128xf32>
    %388 = vector.extract_strided_slice %387 {offsets = [0, 0], sizes = [8, 8], strides = [1, 1]} : vector<8x128xf32> to vector<8x8xf32>
    %cst_253 = arith.constant 0.000000e+00 : f32
    %389 = vector.broadcast %cst_253 : f32 to vector<8x8xf32>
    %390 = arith.select %368, %388, %389 : vector<8x8xi1>, vector<8x8xf32>
    %c0_254 = arith.constant 0 : index
    %c1_255 = arith.constant 1 : index
    %c0_256 = arith.constant 0 : index
    %c24_257 = arith.constant 24 : index
    %391 = vector.load %arg3[%c0_254, %c1_255, %c0_256, %c24_257] : memref<1x4x8x40xf32, #tpu.memory_space<vmem>>, vector<1x1x8x8xf32>
    %392 = vector.shape_cast %391 : vector<1x1x8x8xf32> to vector<8x8xf32>
    %393 = vector.shape_cast %390 : vector<8x8xf32> to vector<1x1x8x8xf32>
    tpu.vector_store %arg3[%c0_254, %c1_255, %c0_256, %c24_257], %393 {strides = array<i32>} : memref<1x4x8x40xf32, #tpu.memory_space<vmem>>, vector<1x1x8x8xf32>,
    %c3_258 = arith.constant 3 : index
    %c2_259 = arith.constant 2 : index
    %394 = arith.index_cast %113 : i32 to index
    %c0_260 = arith.constant 0 : index
    %395 = vector.load %arg4[%c3_258, %c2_259, %394, %c0_260] : memref<5x4x24x128xf32, #tpu.memory_space<vmem>>, vector<1x1x8x128xf32>
    %396 = vector.shape_cast %395 : vector<1x1x8x128xf32> to vector<8x128xf32>
    %397 = tpu.dynamic_rotate %396 by %124 dim 1 : vector<8x128xf32>, i32 -> vector<8x128xf32>
    %398 = vector.extract_strided_slice %397 {offsets = [0, 0], sizes = [8, 8], strides = [1, 1]} : vector<8x128xf32> to vector<8x8xf32>
    %cst_261 = arith.constant 0.000000e+00 : f32
    %399 = vector.broadcast %cst_261 : f32 to vector<8x8xf32>
    %400 = arith.select %368, %398, %399 : vector<8x8xi1>, vector<8x8xf32>
    %c0_262 = arith.constant 0 : index
    %c2_263 = arith.constant 2 : index
    %c0_264 = arith.constant 0 : index
    %c24_265 = arith.constant 24 : index
    %401 = vector.load %arg3[%c0_262, %c2_263, %c0_264, %c24_265] : memref<1x4x8x40xf32, #tpu.memory_space<vmem>>, vector<1x1x8x8xf32>
    %402 = vector.shape_cast %401 : vector<1x1x8x8xf32> to vector<8x8xf32>
    %403 = vector.shape_cast %400 : vector<8x8xf32> to vector<1x1x8x8xf32>
    tpu.vector_store %arg3[%c0_262, %c2_263, %c0_264, %c24_265], %403 {strides = array<i32>} : memref<1x4x8x40xf32, #tpu.memory_space<vmem>>, vector<1x1x8x8xf32>,
    %c3_266 = arith.constant 3 : index
    %c3_267 = arith.constant 3 : index
    %404 = arith.index_cast %113 : i32 to index
    %c0_268 = arith.constant 0 : index
    %405 = vector.load %arg4[%c3_266, %c3_267, %404, %c0_268] : memref<5x4x24x128xf32, #tpu.memory_space<vmem>>, vector<1x1x8x128xf32>
    %406 = vector.shape_cast %405 : vector<1x1x8x128xf32> to vector<8x128xf32>
    %407 = tpu.dynamic_rotate %406 by %124 dim 1 : vector<8x128xf32>, i32 -> vector<8x128xf32>
    %408 = vector.extract_strided_slice %407 {offsets = [0, 0], sizes = [8, 8], strides = [1, 1]} : vector<8x128xf32> to vector<8x8xf32>
    %cst_269 = arith.constant 0.000000e+00 : f32
    %409 = vector.broadcast %cst_269 : f32 to vector<8x8xf32>
    %410 = arith.select %368, %408, %409 : vector<8x8xi1>, vector<8x8xf32>
    %c0_270 = arith.constant 0 : index
    %c3_271 = arith.constant 3 : index
    %c0_272 = arith.constant 0 : index
    %c24_273 = arith.constant 24 : index
    %411 = vector.load %arg3[%c0_270, %c3_271, %c0_272, %c24_273] : memref<1x4x8x40xf32, #tpu.memory_space<vmem>>, vector<1x1x8x8xf32>
    %412 = vector.shape_cast %411 : vector<1x1x8x8xf32> to vector<8x8xf32>
    %413 = vector.shape_cast %410 : vector<8x8xf32> to vector<1x1x8x8xf32>
    tpu.vector_store %arg3[%c0_270, %c3_271, %c0_272, %c24_273], %413 {strides = array<i32>} : memref<1x4x8x40xf32, #tpu.memory_space<vmem>>, vector<1x1x8x8xf32>,
    %414 = vector.broadcast %133 : i32 to vector<8x8xi32>
    %415 = arith.addi %156, %414 : vector<8x8xi32>
    %c0_i32_274 = arith.constant 0 : i32
    %416 = vector.broadcast %c0_i32_274 : i32 to vector<8x8xi32>
    %417 = arith.cmpi sge, %415, %416 : vector<8x8xi32>
    %418 = vector.broadcast %133 : i32 to vector<8x8xi32>
    %419 = arith.addi %156, %418 : vector<8x8xi32>
    %c32_i32_275 = arith.constant 32 : i32
    %420 = vector.broadcast %c32_i32_275 : i32 to vector<8x8xi32>
    %421 = arith.cmpi slt, %419, %420 : vector<8x8xi32>
    %422 = arith.andi %417, %421 : vector<8x8xi1>
    %423 = vector.broadcast %128 : i32 to vector<8x8xi32>
    %424 = arith.addi %157, %423 : vector<8x8xi32>
    %c0_i32_276 = arith.constant 0 : i32
    %425 = vector.broadcast %c0_i32_276 : i32 to vector<8x8xi32>
    %426 = arith.cmpi sge, %424, %425 : vector<8x8xi32>
    %427 = arith.andi %422, %426 : vector<8x8xi1>
    %428 = vector.broadcast %128 : i32 to vector<8x8xi32>
    %429 = arith.addi %157, %428 : vector<8x8xi32>
    %c128_i32_277 = arith.constant 128 : i32
    %430 = vector.broadcast %c128_i32_277 : i32 to vector<8x8xi32>
    %431 = arith.cmpi slt, %429, %430 : vector<8x8xi32>
    %432 = arith.andi %427, %431 : vector<8x8xi1>
    %c4_i32_278 = arith.constant 4 : i32
    %c4_i32_279 = arith.constant 4 : i32
    %c0_i32_280 = arith.constant 0 : i32
    %c0_i32_281 = arith.constant 0 : i32
    %433 = tpu.memref_slice %arg2[%c0_i32_280, %135, %c0_i32_281] : memref<4x32x128xf32, #tpu.memory_space<any>> -> memref<4x8x128xf32, #tpu.memory_space<any>>
    %c0_i32_282 = arith.constant 0 : i32
    %c8_i32_283 = arith.constant 8 : i32
    %c0_i32_284 = arith.constant 0 : i32
    %434 = tpu.memref_slice %arg4[%c4_i32_278, %c0_i32_282, %c8_i32_283, %c0_i32_284] : memref<5x4x24x128xf32, #tpu.memory_space<vmem>> -> memref<1x4x8x128xf32, #tpu.memory_space<vmem>>
    %435 = tpu.memref_squeeze %434 : memref<1x4x8x128xf32, #tpu.memory_space<vmem>> -> memref<4x8x128xf32, #tpu.memory_space<vmem>>
    %436 = tpu.memref_slice %arg5[%c4_i32_279] : memref<5x!tpu.dma_semaphore, #tpu.memory_space<semaphore_mem>> -> memref<1x!tpu.dma_semaphore, #tpu.memory_space<semaphore_mem>>
    %437 = tpu.memref_squeeze %436 : memref<1x!tpu.dma_semaphore, #tpu.memory_space<semaphore_mem>> -> memref<!tpu.dma_semaphore, #tpu.memory_space<semaphore_mem>>
    tpu.wait_dma2 semaphore(%437 : memref<!tpu.dma_semaphore, #tpu.memory_space<semaphore_mem>>) src(%433 : memref<4x8x128xf32, #tpu.memory_space<any>>) dst(%435 : memref<4x8x128xf32, #tpu.memory_space<vmem>>)
    %c4 = arith.constant 4 : index
    %c0_285 = arith.constant 0 : index
    %438 = arith.index_cast %144 : i32 to index
    %c0_286 = arith.constant 0 : index
    %439 = vector.load %arg4[%c4, %c0_285, %438, %c0_286] : memref<5x4x24x128xf32, #tpu.memory_space<vmem>>, vector<1x1x8x128xf32>
    %440 = vector.shape_cast %439 : vector<1x1x8x128xf32> to vector<8x128xf32>
    %441 = tpu.dynamic_rotate %440 by %155 dim 1 : vector<8x128xf32>, i32 -> vector<8x128xf32>
    %442 = vector.extract_strided_slice %441 {offsets = [0, 0], sizes = [8, 8], strides = [1, 1]} : vector<8x128xf32> to vector<8x8xf32>
    %cst_287 = arith.constant 0.000000e+00 : f32
    %443 = vector.broadcast %cst_287 : f32 to vector<8x8xf32>
    %444 = arith.select %432, %442, %443 : vector<8x8xi1>, vector<8x8xf32>
    %c0_288 = arith.constant 0 : index
    %c0_289 = arith.constant 0 : index
    %c0_290 = arith.constant 0 : index
    %c32 = arith.constant 32 : index
    %445 = vector.load %arg3[%c0_288, %c0_289, %c0_290, %c32] : memref<1x4x8x40xf32, #tpu.memory_space<vmem>>, vector<1x1x8x8xf32>
    %446 = vector.shape_cast %445 : vector<1x1x8x8xf32> to vector<8x8xf32>
    %447 = vector.shape_cast %444 : vector<8x8xf32> to vector<1x1x8x8xf32>
    tpu.vector_store %arg3[%c0_288, %c0_289, %c0_290, %c32], %447 {strides = array<i32>} : memref<1x4x8x40xf32, #tpu.memory_space<vmem>>, vector<1x1x8x8xf32>,
    %c4_291 = arith.constant 4 : index
    %c1_292 = arith.constant 1 : index
    %448 = arith.index_cast %144 : i32 to index
    %c0_293 = arith.constant 0 : index
    %449 = vector.load %arg4[%c4_291, %c1_292, %448, %c0_293] : memref<5x4x24x128xf32, #tpu.memory_space<vmem>>, vector<1x1x8x128xf32>
    %450 = vector.shape_cast %449 : vector<1x1x8x128xf32> to vector<8x128xf32>
    %451 = tpu.dynamic_rotate %450 by %155 dim 1 : vector<8x128xf32>, i32 -> vector<8x128xf32>
    %452 = vector.extract_strided_slice %451 {offsets = [0, 0], sizes = [8, 8], strides = [1, 1]} : vector<8x128xf32> to vector<8x8xf32>
    %cst_294 = arith.constant 0.000000e+00 : f32
    %453 = vector.broadcast %cst_294 : f32 to vector<8x8xf32>
    %454 = arith.select %432, %452, %453 : vector<8x8xi1>, vector<8x8xf32>
    %c0_295 = arith.constant 0 : index
    %c1_296 = arith.constant 1 : index
    %c0_297 = arith.constant 0 : index
    %c32_298 = arith.constant 32 : index
    %455 = vector.load %arg3[%c0_295, %c1_296, %c0_297, %c32_298] : memref<1x4x8x40xf32, #tpu.memory_space<vmem>>, vector<1x1x8x8xf32>
    %456 = vector.shape_cast %455 : vector<1x1x8x8xf32> to vector<8x8xf32>
    %457 = vector.shape_cast %454 : vector<8x8xf32> to vector<1x1x8x8xf32>
    tpu.vector_store %arg3[%c0_295, %c1_296, %c0_297, %c32_298], %457 {strides = array<i32>} : memref<1x4x8x40xf32, #tpu.memory_space<vmem>>, vector<1x1x8x8xf32>,
    %c4_299 = arith.constant 4 : index
    %c2_300 = arith.constant 2 : index
    %458 = arith.index_cast %144 : i32 to index
    %c0_301 = arith.constant 0 : index
    %459 = vector.load %arg4[%c4_299, %c2_300, %458, %c0_301] : memref<5x4x24x128xf32, #tpu.memory_space<vmem>>, vector<1x1x8x128xf32>
    %460 = vector.shape_cast %459 : vector<1x1x8x128xf32> to vector<8x128xf32>
    %461 = tpu.dynamic_rotate %460 by %155 dim 1 : vector<8x128xf32>, i32 -> vector<8x128xf32>
    %462 = vector.extract_strided_slice %461 {offsets = [0, 0], sizes = [8, 8], strides = [1, 1]} : vector<8x128xf32> to vector<8x8xf32>
    %cst_302 = arith.constant 0.000000e+00 : f32
    %463 = vector.broadcast %cst_302 : f32 to vector<8x8xf32>
    %464 = arith.select %432, %462, %463 : vector<8x8xi1>, vector<8x8xf32>
    %c0_303 = arith.constant 0 : index
    %c2_304 = arith.constant 2 : index
    %c0_305 = arith.constant 0 : index
    %c32_306 = arith.constant 32 : index
    %465 = vector.load %arg3[%c0_303, %c2_304, %c0_305, %c32_306] : memref<1x4x8x40xf32, #tpu.memory_space<vmem>>, vector<1x1x8x8xf32>
    %466 = vector.shape_cast %465 : vector<1x1x8x8xf32> to vector<8x8xf32>
    %467 = vector.shape_cast %464 : vector<8x8xf32> to vector<1x1x8x8xf32>
    tpu.vector_store %arg3[%c0_303, %c2_304, %c0_305, %c32_306], %467 {strides = array<i32>} : memref<1x4x8x40xf32, #tpu.memory_space<vmem>>, vector<1x1x8x8xf32>,
    %c4_307 = arith.constant 4 : index
    %c3_308 = arith.constant 3 : index
    %468 = arith.index_cast %144 : i32 to index
    %c0_309 = arith.constant 0 : index
    %469 = vector.load %arg4[%c4_307, %c3_308, %468, %c0_309] : memref<5x4x24x128xf32, #tpu.memory_space<vmem>>, vector<1x1x8x128xf32>
    %470 = vector.shape_cast %469 : vector<1x1x8x128xf32> to vector<8x128xf32>
    %471 = tpu.dynamic_rotate %470 by %155 dim 1 : vector<8x128xf32>, i32 -> vector<8x128xf32>
    %472 = vector.extract_strided_slice %471 {offsets = [0, 0], sizes = [8, 8], strides = [1, 1]} : vector<8x128xf32> to vector<8x8xf32>
    %cst_310 = arith.constant 0.000000e+00 : f32
    %473 = vector.broadcast %cst_310 : f32 to vector<8x8xf32>
    %474 = arith.select %432, %472, %473 : vector<8x8xi1>, vector<8x8xf32>
    %c0_311 = arith.constant 0 : index
    %c3_312 = arith.constant 3 : index
    %c0_313 = arith.constant 0 : index
    %c32_314 = arith.constant 32 : index
    %475 = vector.load %arg3[%c0_311, %c3_312, %c0_313, %c32_314] : memref<1x4x8x40xf32, #tpu.memory_space<vmem>>, vector<1x1x8x8xf32>
    %476 = vector.shape_cast %475 : vector<1x1x8x8xf32> to vector<8x8xf32>
    %477 = vector.shape_cast %474 : vector<8x8xf32> to vector<1x1x8x8xf32>
    tpu.vector_store %arg3[%c0_311, %c3_312, %c0_313, %c32_314], %477 {strides = array<i32>} : memref<1x4x8x40xf32, #tpu.memory_space<vmem>>, vector<1x1x8x8xf32>,
    return
  }
  func.func @transform_1(%arg0: i32, %arg1: memref<10xi32, #tpu.memory_space<smem>>) -> (i32, i32, i32, i32) {
    %c0_i32 = arith.constant 0 : i32
    %c0_i32_0 = arith.constant 0 : i32
    %c0_i32_1 = arith.constant 0 : i32
    %c0_i32_2 = arith.constant 0 : i32
    return %arg0, %c0_i32, %c0_i32_0, %c0_i32_1 : i32, i32, i32, i32
  }
}

</mosaic_0001>

<bundles_post_ra>
// kernel: tpu_custom_call.1
= control target key start
LH: loop header
LB: loop body
LE: loop exit
PB: predicated region body
PF: predicated region fallthrough
CT: control target
= control target key end

     0   :  { %s1270_s0 = inlined_call_operand.hbm [shape: s32[10], index: 0, kind: input, shape index: {}]   ;;  %s1271_s1 = inlined_call_operand.hbm [shape: f32[4,32,128], index: 1, kind: input, shape index: {}]   ;;  %s1272_s2 = inlined_call_operand.hbm [shape: f32[1,4,8,40], index: 2, kind: output, shape index: {}]  }
   0x1   :  { %1282 = sst [smem:[#allocation25_spill]] %s1272_s2  ;;  %s738_s11 = scalar_lea.hbm %s1270_s0, 16 }
   0x2   :  { %p739_p0 = scmp.ne.s32.totalorder %s1270_s0, %s738_s11  ;;  %p742_p1 = scmp.lt.u32.totalorder %s738_s11, %s1270_s0 }
   0x4   :  { %p744_p2 = pnand %p742_p1, %p739_p0 }
   0x6   :  { %747 = shalt.err (!%p744_p2)  }
   0x7   :  { %s904_s16 = smov [#allocation5]  }
   0x8   :  { %8 = dma.hbm_to_smem %s1270_s0, 16, %s904_s16, [#allocation4] }
   0x9   :  { %890 = dma.done.wait [#allocation4], 16 }
   0xa   :  { %891 = vsyncadd [#allocation4], 4294967280 }
   0xb   :  { %10 = sfence }
   0xc   :  { %11 = vsyncpa [#allocation7], 0  ;;  %s14_s19 = sld [smem:[#allocation5]]  ;;  %s946_s20 = sld [smem:[#allocation5 + $0x1]]  ;;  %v196_v0 = vlaneseq }
   0xd   :  { %s905_s21 = smov [#allocation2 + $0x8]   ;;  %s954_s0 = sld [smem:[#allocation5 + $0x2]] }
   0xe   :  { %s30_s22 = sshll.u32 %s905_s21, 4  ;;  %v950_v1 = vshrl.u32 %v196_v0, 7  ;;  %v952_v2 = vand.u32 127, %v196_v0  ;;  %s956_s23 = sld [smem:[#allocation5 + $0x3]]  ;;  %s948_s22 = int_to_ptr.vmem [resolvable:$true] %s30_s22 }
   0xf   :  { %s958_s24 = sld [smem:[#allocation5 + $0x4]]  ;;  %s906_s26 = smov [#allocation2 + $0x68]  }
  0x10   :  { %s967_s27 = sshll.u32 %s906_s26, 4  ;;  %s1001_s13 = scalar_lea.hbm %s1271_s1, 2048  ;;  %s68_s27 = int_to_ptr.vmem [resolvable:$true] %s967_s27 }
  0x12   :  { %p17_p3 = scmp.gt.s32.totalorder %s946_s20, 0  ;;  %p601_p4 = scmp.lt.s32.totalorder %s946_s20, 24  ;;  %v200_v3 = vstv %s946_s20  ;;  %v205_v4 = vstv %s14_s19 }
  0x13   :  { %s963_s25 = ssub.s32 0, %s14_s19  ;;  %v201_v5 = vadd.s32 %v200_v3, %v950_v1  ;;  %v206_v6 = vadd.s32 %v205_v4, %v952_v2 }
  0x14   :  { %s18_s28 = scalar_select %p17_p3, %s946_s20, 0 }
  0x15   :  { %p36_p5 = scmp.lt.s32.totalorder %s963_s25, 0  ;;  %s37_s29 = ssub.s32 0, %s963_s25  ;;  %vm202_vm0 = vcmp.ge.s32.totalorder %v201_v5, 0  ;;  %vm203_vm1 = vcmp.lt.s32.totalorder %v201_v5, 32  ;;  %vm207_vm2 = vcmp.ge.s32.totalorder %v206_v6, 0  ;;  %vm209_vm3 = vcmp.lt.s32.totalorder %v206_v6, 128 }
  0x16   :  { %s1308_s28 = smov (!%p601_p4, %s18_s28), 24  ;;  %vm204_vm4 = vmand %vm202_vm0, %vm203_vm1  ;;  %s975_s30 = smin.u32 %s37_s29, %s963_s25 }
  0x17   :  { %vm208_vm5 = vmand %vm204_vm4, %vm207_vm2  ;;  %p53_p6 = scmp.gt.s32.totalorder %s956_s23, 0  ;;  %s979_s3 = ssub.s32 %s946_s20, %s1308_s28 }
  0x18   :  { %s611_s4 = sshll.u32 %s1308_s28, 4  ;;  %vm981_vm6 = vmand %vm208_vm5, %vm209_vm3  ;;  %p22_p7 = scmp.gt.s32.totalorder %s979_s3, 4294967288 }
  0x19   :  { %p606_p8 = scmp.lt.s32.totalorder %s979_s3, 8  ;;  %s990_s7 = scalar_lea.hbm %s1271_s1, %s611_s4 }
  0x1a   :  { %s39_s8 = sand.u32 127, %s975_s30   ;;  %s748_s10 = scalar_lea.hbm %s990_s7, 512 }
  0x1b   :  { %s994_s9 = scalar_select %p22_p7, %s979_s3, 4294967288 }
  0x1c   :  { %p749_p9 = scmp.ne.s32.totalorder %s990_s7, %s748_s10  ;;  %p751_p10 = scmp.lt.u32.totalorder %s990_s7, %s1271_s1 }
  0x1d   :  { %p752_p11 = scmp.lt.u32.totalorder %s1001_s13, %s748_s10  ;;  %p754_p13 = scmp.lt.u32.totalorder %s748_s10, %s990_s7 }
  0x1f   :  { %p753_p12 = por %p752_p11, %p751_p10 }
  0x21   :  { %p755_p0 = por %p754_p13, %p753_p12 }
  0x23   :  { %p756_p1 = pnand %p755_p0, %p749_p9 }
  0x25   :  { %759 = shalt.err (!%p756_p1)  }
  0x26   :  { %s760_s16 = scalar_lea.vmem %s948_s22, 512  ;;  %s907_s17 = smov [#allocation2]  }
  0x27   :  { %p761_p2 = scmp.ne.s32.totalorder %s948_s22, %s760_s16  ;;  %s762_s18 = sshll.u32 %s907_s17, 4  ;;  %s1011_s18 = int_to_ptr.vmem [resolvable:$false] %s762_s18 }
  0x28   :  { %s1014_s19 = scalar_lea.vmem %s1011_s18, 7680  ;;  %p765_p3 = scmp.lt.s32.totalorder %s948_s22, %s1011_s18 }
  0x29   :  { %p766_p4 = scmp.lt.s32.totalorder %s1014_s19, %s760_s16 }
  0x2b   :  { %p767_p7 = por %p766_p4, %p765_p3 }
  0x2d   :  { %p768_p10 = pnand %p767_p7, %p761_p2 }
  0x2f   :  { %771 = shalt.err (!%p768_p10)  }
  0x30   :  { %s1273_s20 = smov 512   ;;  %s1275_s21 = smov 384  }
  0x31   :  { %s1277_s26 = smov 8   ;;  %s1310_s9 = smov (!%p606_p8, %s994_s9), 8 }
  0x32   :  { %33 = dma.hbm_to_vmem [thread:$0]  %s990_s7, 512, %s948_s22, [#allocation3], %s1273_s20, %s1275_s21, %s1277_s26 }
  0x33   :  { %s40_s28 = ssub.s32 0, %s39_s8  ;;  %p617_p9 = scmp.lt.s32.totalorder %s956_s23, 24 }
  0x34   :  { %s1312_s28 = smov (!%p36_p5, %s40_s28), %s39_s8 }
  0x35   :  { %s54_s29 = scalar_select %p53_p6, %s956_s23, 0 }
  0x36   :  { %p614_p11 = scmp.lt.s32.totalorder %s1312_s28, 0  ;;  %s46_s4 = sadd.s32 128, %s1312_s28 }
  0x37   :  { %s1314_s29 = smov (!%p617_p9, %s54_s29), 24 }
  0x38   :  { %s1316_s4 = smov (!%p614_p11, %s46_s4), %s1312_s28  ;;  %s57_s5 = ssub.s32 %s956_s23, %s1314_s29 }
  0x39   :  { %s627_s6 = sshll.u32 %s1314_s29, 4  ;;  %p58_p12 = scmp.gt.s32.totalorder %s57_s5, 4294967288 }
  0x3a   :  { %p622_p13 = scmp.lt.s32.totalorder %s57_s5, 8  ;;  %s63_s7 = scalar_lea.hbm %s1271_s1, %s627_s6 }
  0x3b   :  { %s59_s30 = scalar_select %p58_p12, %s57_s5, 4294967288 }
  0x3c   :  { %s772_s25 = scalar_lea.hbm %s63_s7, 512  ;;  %p775_p6 = scmp.lt.u32.totalorder %s63_s7, %s1271_s1 }
  0x3d   :  { %p773_p5 = scmp.ne.s32.totalorder %s63_s7, %s772_s25  ;;  %p776_p8 = scmp.lt.u32.totalorder %s1001_s13, %s772_s25 }
  0x3e   :  { %p778_p1 = scmp.lt.u32.totalorder %s772_s25, %s63_s7 }
  0x3f   :  { %p777_p0 = por %p776_p8, %p775_p6 }
  0x41   :  { %p779_p2 = por %p778_p1, %p777_p0 }
  0x43   :  { %p780_p3 = pnand %p779_p2, %p773_p5 }
  0x45   :  { %783 = shalt.err (!%p780_p3)  }
  0x46   :  { %s784_s11 = scalar_lea.vmem %s68_s27, 512  ;;  %p789_p7 = scmp.lt.s32.totalorder %s68_s27, %s1011_s18 }
  0x47   :  { %p785_p4 = scmp.ne.s32.totalorder %s68_s27, %s784_s11  ;;  %p790_p10 = scmp.lt.s32.totalorder %s1014_s19, %s784_s11 }
  0x49   :  { %p791_p9 = por %p790_p10, %p789_p7 }
  0x4b   :  { %p792_p11 = pnand %p791_p9, %p785_p4 }
  0x4d   :  { %795 = shalt.err (!%p792_p11)  }
  0x4e   :  { %70 = dma.hbm_to_vmem [thread:$0]  %s63_s7, 512, %s68_s27, [#allocation3 + $0x1], %s1273_s20, %s1275_s21, %s1277_s26 }
  0x4f   :  { %s1318_s30 = smov (!%p622_p13, %s59_s30), 8  ;;  %s72_s12 = ssub.s32 0, %s954_s0 }
  0x50   :  { %s1059_s14 = sld [smem:[#allocation5 + $0x5]]  ;;  %p73_p12 = scmp.lt.s32.totalorder %s72_s12, 0 }
  0x51   :  { %s74_s15 = ssub.s32 0, %s72_s12  ;;  %s911_s28 = smov [#allocation2 + $0xc8]  }
  0x52   :  { %s628_s16 = smin.u32 %s74_s15, %s72_s12  ;;  %s104_s29 = sshll.u32 %s911_s28, 4  ;;  %s1061_s29 = int_to_ptr.vmem [resolvable:$true] %s104_s29 }
  0x53   :  { %s76_s17 = sand.u32 127, %s628_s16   ;;  %s1069_s22 = ssub.s32 0, %s958_s24 }
  0x54   :  { %s77_s6 = ssub.s32 0, %s76_s17  ;;  %s1071_s3 = sld [smem:[#allocation5 + $0x6]] }
  0x55   :  { %s1320_s6 = smov (!%p73_p12, %s77_s6), %s76_s17  ;;  %p110_p1 = scmp.lt.s32.totalorder %s1069_s22, 0 }
  0x56   :  { %p90_p13 = scmp.gt.s32.totalorder %s1059_s14, 0  ;;  %p633_p5 = scmp.lt.s32.totalorder %s1059_s14, 24 }
  0x57   :  { %p630_p6 = scmp.lt.s32.totalorder %s1320_s6, 0  ;;  %s83_s27 = sadd.s32 128, %s1320_s6 }
  0x58   :  { %s91_s5 = scalar_select %p90_p13, %s1059_s14, 0 }
  0x59   :  { %s1322_s27 = smov (!%p630_p6, %s83_s27), %s1320_s6 }
  0x5a   :  { %s1324_s5 = smov (!%p633_p5, %s91_s5), 24  ;;  %1285 = sst [smem:[#allocation20_spill]] %s1071_s3 }
  0x5b   :  { %s94_s7 = ssub.s32 %s1059_s14, %s1324_s5  ;;  %s643_s25 = sshll.u32 %s1324_s5, 4 }
  0x5c   :  { %p95_p8 = scmp.gt.s32.totalorder %s94_s7, 4294967288  ;;  %p638_p0 = scmp.lt.s32.totalorder %s94_s7, 8 }
  0x5d   :  { %s100_s11 = scalar_lea.hbm %s1271_s1, %s643_s25 }
  0x5e   :  { %s96_s12 = scalar_select %p95_p8, %s94_s7, 4294967288 }
  0x5f   :  { %s796_s15 = scalar_lea.hbm %s100_s11, 512  ;;  %p799_p3 = scmp.lt.u32.totalorder %s100_s11, %s1271_s1 }
  0x60   :  { %p797_p2 = scmp.ne.s32.totalorder %s100_s11, %s796_s15  ;;  %p800_p4 = scmp.lt.u32.totalorder %s1001_s13, %s796_s15 }
  0x61   :  { %p802_p10 = scmp.lt.u32.totalorder %s796_s15, %s100_s11 }
  0x62   :  { %p801_p7 = por %p800_p4, %p799_p3 }
  0x64   :  { %p803_p9 = por %p802_p10, %p801_p7 }
  0x66   :  { %p804_p11 = pnand %p803_p9, %p797_p2 }
  0x68   :  { %807 = shalt.err (!%p804_p11)  }
  0x69   :  { %s808_s28 = scalar_lea.vmem %s1061_s29, 512  ;;  %p813_p13 = scmp.lt.s32.totalorder %s1061_s29, %s1011_s18 }
  0x6a   :  { %p809_p12 = scmp.ne.s32.totalorder %s1061_s29, %s808_s28  ;;  %p814_p5 = scmp.lt.s32.totalorder %s1014_s19, %s808_s28 }
  0x6c   :  { %p815_p6 = por %p814_p5, %p813_p13 }
  0x6e   :  { %p816_p8 = pnand %p815_p6, %p809_p12 }
  0x70   :  { %819 = shalt.err (!%p816_p8)  }
  0x71   :  { %107 = dma.hbm_to_vmem [thread:$0]  %s100_s11, 512, %s1061_s29, [#allocation3 + $0x2], %s1273_s20, %s1275_s21, %s1277_s26 }
  0x72   :  { %s1326_s12 = smov (!%p638_p0, %s96_s12), 8  ;;  %s111_s6 = ssub.s32 0, %s1069_s22 }
  0x73   :  { %1286 = sst [smem:[#allocation21_spill]] %s1326_s12  ;;  %s1095_s5 = sld [smem:[#allocation5 + $0x7]] }
  0x74   :  { %s644_s25 = smin.u32 %s111_s6, %s1069_s22  ;;  %s912_s10 = smov [#allocation2 + $0x128]  }
  0x75   :  { %s113_s8 = sand.u32 127, %s644_s25   ;;  %s141_s15 = sshll.u32 %s912_s10, 4  ;;  %s1098_s15 = int_to_ptr.vmem [resolvable:$true] %s141_s15 }
  0x76   :  { %s114_s16 = ssub.s32 0, %s113_s8  ;;  %s1103_s29 = ssub.s32 0, %s1071_s3 }
  0x77   :  { %s1328_s16 = smov (!%p110_p1, %s114_s16), %s113_s8  ;;  %s1105_s7 = sld [smem:[#allocation5 + $0x8]] }
  0x78   :  { %p646_p0 = scmp.lt.s32.totalorder %s1328_s16, 0  ;;  %s120_s11 = sadd.s32 128, %s1328_s16 }
  0x79   :  { %1287 = sst [smem:[#allocation22_spill]] %s1095_s5  ;;  %p127_p2 = scmp.gt.s32.totalorder %s1095_s5, 0 }
  0x7a   :  { %p649_p3 = scmp.lt.s32.totalorder %s1095_s5, 24  ;;  %s1330_s11 = smov (!%p646_p0, %s120_s11), %s1328_s16 }
  0x7b   :  { %1288 = sst [smem:[#allocation23_spill]] %s1330_s11  ;;  %p147_p4 = scmp.lt.s32.totalorder %s1103_s29, 0 }
  0x7c   :  { %s128_s17 = scalar_select %p127_p2, %s1095_s5, 0 }
  0x7d   :  { %s148_s28 = ssub.s32 0, %s1103_s29  ;;  %s1117_s6 = sld [smem:[#allocation5 + $0x9]] }
  0x7e   :  { %s1332_s17 = smov (!%p649_p3, %s128_s17), 24  ;;  %s1115_s22 = smin.u32 %s148_s28, %s1103_s29 }
  0x7f   :  { %s131_s25 = ssub.s32 %s1095_s5, %s1332_s17  ;;  %s659_s8 = sshll.u32 %s1332_s17, 4 }
  0x80   :  { %p132_p1 = scmp.gt.s32.totalorder %s131_s25, 4294967288  ;;  %p654_p7 = scmp.lt.s32.totalorder %s131_s25, 8 }
  0x81   :  { %s137_s21 = scalar_lea.hbm %s1271_s1, %s659_s8  ;;  %s150_s16 = sand.u32 127, %s1115_s22  }
  0x82   :  { %s133_s26 = scalar_select %p132_p1, %s131_s25, 4294967288 }
  0x83   :  { %s820_s2 = scalar_lea.hbm %s137_s21, 512  ;;  %p823_p9 = scmp.lt.u32.totalorder %s137_s21, %s1271_s1 }
  0x84   :  { %p821_p10 = scmp.ne.s32.totalorder %s137_s21, %s820_s2  ;;  %p824_p11 = scmp.lt.u32.totalorder %s1001_s13, %s820_s2 }
  0x85   :  { %p826_p13 = scmp.lt.u32.totalorder %s820_s2, %s137_s21 }
  0x86   :  { %p825_p12 = por %p824_p11, %p823_p9 }
  0x88   :  { %p827_p5 = por %p826_p13, %p825_p12 }
  0x8a   :  { %p828_p6 = pnand %p827_p5, %p821_p10 }
  0x8c   :  { %831 = shalt.err (!%p828_p6)  }
  0x8d   :  { %s832_s20 = scalar_lea.vmem %s1098_s15, 512  ;;  %p837_p0 = scmp.lt.s32.totalorder %s1098_s15, %s1011_s18 }
  0x8e   :  { %p833_p8 = scmp.ne.s32.totalorder %s1098_s15, %s832_s20  ;;  %p838_p2 = scmp.lt.s32.totalorder %s1014_s19, %s832_s20 }
  0x90   :  { %p839_p3 = por %p838_p2, %p837_p0 }
  0x92   :  { %p840_p1 = pnand %p839_p3, %p833_p8 }
  0x94   :  { %843 = shalt.err (!%p840_p1)  }
  0x95   :  { %s1289_s3 = smov 8   ;;  %s1290_s12 = smov 384  }
  0x96   :  { %s1291_s17 = smov 512   ;;  %s1334_s26 = smov (!%p654_p7, %s133_s26), 8 }
  0x97   :  { %144 = dma.hbm_to_vmem [thread:$0]  %s137_s21, 512, %s1098_s15, [#allocation3 + $0x3], %s1291_s17, %s1290_s12, %s1289_s3 }
  0x98   :  { %1292 = sst [smem:[#allocation24_spill]] %s1334_s26  ;;  %s151_s2 = ssub.s32 0, %s150_s16 }
  0x99   :  { %p164_p10 = scmp.gt.s32.totalorder %s1117_s6, 0  ;;  %s1336_s2 = smov (!%p147_p4, %s151_s2), %s150_s16 }
  0x9a   :  { %p662_p9 = scmp.lt.s32.totalorder %s1336_s2, 0  ;;  %s157_s22 = sadd.s32 128, %s1336_s2 }
  0x9b   :  { %s165_s28 = scalar_select %p164_p10, %s1117_s6, 0 }
  0x9c   :  { %p665_p11 = scmp.lt.s32.totalorder %s1117_s6, 24  ;;  %s1338_s22 = smov (!%p662_p9, %s157_s22), %s1336_s2 }
  0x9d   :  { %s913_s8 = smov [#allocation2 + $0x188]   ;;  %s1148_s20 = ssub.s32 0, %s1105_s7 }
  0x9e   :  { %s1340_s28 = smov (!%p665_p11, %s165_s28), 24  ;;  %s178_s10 = sshll.u32 %s913_s8, 4  ;;  %s179_s10 = int_to_ptr.vmem [resolvable:$true] %s178_s10 }
  0x9f   :  { %s168_s21 = ssub.s32 %s1117_s6, %s1340_s28  ;;  %s675_s15 = sshll.u32 %s1340_s28, 4 }
  0xa0   :  { %p169_p7 = scmp.gt.s32.totalorder %s168_s21, 4294967288  ;;  %p670_p12 = scmp.lt.s32.totalorder %s168_s21, 8 }
  0xa1   :  { %s174_s29 = scalar_lea.hbm %s1271_s1, %s675_s15 }
  0xa2   :  { %s170_s16 = scalar_select %p169_p7, %s168_s21, 4294967288 }
  0xa3   :  { %s844_s5 = scalar_lea.hbm %s174_s29, 512  ;;  %p847_p13 = scmp.lt.u32.totalorder %s174_s29, %s1271_s1 }
  0xa4   :  { %p845_p4 = scmp.ne.s32.totalorder %s174_s29, %s844_s5  ;;  %p848_p5 = scmp.lt.u32.totalorder %s1001_s13, %s844_s5 }
  0xa5   :  { %p850_p8 = scmp.lt.u32.totalorder %s844_s5, %s174_s29 }
  0xa6   :  { %p849_p6 = por %p848_p5, %p847_p13 }
  0xa8   :  { %p851_p0 = por %p850_p8, %p849_p6 }
  0xaa   :  { %p852_p2 = pnand %p851_p0, %p845_p4 }
  0xac   :  { %855 = shalt.err (!%p852_p2)  }
  0xad   :  { %s856_s28 = scalar_lea.vmem %s179_s10, 512  ;;  %p861_p1 = scmp.lt.s32.totalorder %s179_s10, %s1011_s18 }
  0xae   :  { %p857_p3 = scmp.ne.s32.totalorder %s179_s10, %s856_s28  ;;  %p862_p10 = scmp.lt.s32.totalorder %s1014_s19, %s856_s28 }
  0xb0   :  { %p863_p9 = por %p862_p10, %p861_p1 }
  0xb2   :  { %p864_p11 = pnand %p863_p9, %p857_p3 }
  0xb4   :  { %867 = shalt.err (!%p864_p11)  }
  0xb5   :  { %181 = dma.hbm_to_vmem [thread:$0]  %s174_s29, 512, %s179_s10, [#allocation3 + $0x4], %s1291_s17, %s1290_s12, %s1289_s3 }
  0xb6   :  { %s1342_s16 = smov (!%p670_p12, %s170_s16), 8  ;;  %p184_p7 = scmp.lt.s32.totalorder %s1148_s20, 0 }
  0xb7   :  { %s185_s1 = ssub.s32 0, %s1148_s20 }
  0xb8   :  { %s676_s13 = smin.u32 %s185_s1, %s1148_s20 }
  0xb9   :  { %s187_s26 = sand.u32 127, %s676_s13  }
  0xba   :  { %s188_s5 = ssub.s32 0, %s187_s26 }
  0xbb   :  { %s1344_s5 = smov (!%p184_p7, %s188_s5), %s187_s26 }
  0xbc   :  { %p678_p4 = scmp.lt.s32.totalorder %s1344_s5, 0  ;;  %s194_s18 = sadd.s32 128, %s1344_s5 }
  0xbe   :  { %s1346_s18 = smov (!%p678_p4, %s194_s18), %s1344_s5 }
  0xbf   :  { %892 = dma.done.wait [#allocation3], 512 }
  0xc0   :  { %893 = vsyncadd [#allocation3], 4294966784  ;;  %v248_v8 = vstv %s956_s23  ;;  %v253_v9 = vstv %s954_s0  ;;  %s217_s19 = sand.u32 127, %s1316_s4   ;;  %s560_s11 = scalar_lea.vmem [#allocation2], %s1310_s9  ;;  %vm222_vm14 = vcmask 64512  }
  0xc1   :  { %v249_v10 = vadd.s32 %v248_v8, %v950_v1  ;;  %v254_v11 = vadd.s32 %v253_v9, %v952_v2  ;;  %v681_v13 = vld [vmem:[%s560_s11 + $0x38] sm:$0xff]  ;;  %v679_v14 = vld [vmem:[%s560_s11 + $0x8] sm:$0xff]  ;;  %v682_v15 = vld [vmem:[%s560_s11 + $0x50] sm:$0xff] }
  0xc2   :  { %235 = vrot.lane.b32.xlu1 %v681_v13, %s217_s19  ;;  %219 = vrot.lane.b32.xlu0 %v679_v14, %s217_s19  ;;  %v680_v16 = vld [vmem:[%s560_s11 + $0x20] sm:$0xff] }
  0xc3   :  { %vm250_vm7 = vcmp.ge.s32.totalorder %v249_v10, 0  ;;  %vm251_vm8 = vcmp.lt.s32.totalorder %v249_v10, 32  ;;  %vm255_vm9 = vcmp.ge.s32.totalorder %v254_v11, 0  ;;  %vm257_vm10 = vcmp.lt.s32.totalorder %v254_v11, 128 }
  0xc4   :  { %vm252_vm11 = vmand %vm250_vm7, %vm251_vm8 }
  0xc5   :  { %vm256_vm12 = vmand %vm252_vm11, %vm255_vm9 }
  0xc6   :  { %vm1176_vm13 = vmand %vm256_vm12, %vm257_vm10  ;;  %243 = vrot.lane.b32.xlu1 %v682_v15, %s217_s19  ;;  %227 = vrot.lane.b32.xlu0 %v680_v16, %s217_s19 }
 0x134   :  { %v236_v17 = vpop.permute.xlu1 %235  ;;  %v220_v18 = vpop.permute.xlu0 %219 }
 0x135   :  { %v237_v19 = vsel %vm981_vm6, %v236_v17, 0.0  ;;  %v221_v20 = vsel %vm981_vm6, %v220_v18, 0.0 }
 0x136   :  { %239 = vst.msk [vmem:[#allocation6 + $0x10] sm:$0xff] %vm222_vm14, %v237_v19  ;;  %223 = vst.msk [vmem:[#allocation6] sm:$0xff] %vm222_vm14, %v221_v20 }
 0x138   :  { %v244_v21 = vpop.permute.xlu1 %243  ;;  %v228_v22 = vpop.permute.xlu0 %227 }
 0x139   :  { %v245_v23 = vsel %vm981_vm6, %v244_v21, 0.0  ;;  %v229_v24 = vsel %vm981_vm6, %v228_v22, 0.0 }
 0x13a   :  { %247 = vst.msk [vmem:[#allocation6 + $0x18] sm:$0xff] %vm222_vm14, %v245_v23  ;;  %231 = vst.msk [vmem:[#allocation6 + $0x8] sm:$0xff] %vm222_vm14, %v229_v24 }
 0x13b   :  { %894 = dma.done.wait [#allocation3 + $0x1], 512 }
 0x13c   :  { %895 = vsyncadd [#allocation3 + $0x1], 4294966784  ;;  %s264_s0 = sand.u32 127, %s1322_s27   ;;  %s568_s23 = scalar_lea.vmem [#allocation2], %s1318_s30  ;;  %v311_v29 = vstv %s1059_s14  ;;  %v316_v31 = vstv %s958_s24  ;;  %vm273_vm6 = vcmask 130112  }
 0x13d   :  { %v683_v25 = vld [vmem:[%s568_s23 + $0x68] sm:$0xff]  ;;  %v685_v26 = vld [vmem:[%s568_s23 + $0x98] sm:$0xff]  ;;  %v684_v27 = vld [vmem:[%s568_s23 + $0x80] sm:$0xff]  ;;  %v312_v30 = vadd.s32 %v311_v29, %v950_v1  ;;  %v317_v32 = vadd.s32 %v316_v31, %v952_v2 }
 0x13e   :  { %266 = vrot.lane.b32.xlu0 %v683_v25, %s264_s0  ;;  %291 = vrot.lane.b32.xlu1 %v685_v26, %s264_s0  ;;  %v686_v28 = vld [vmem:[%s568_s23 + $0xb0] sm:$0xff] }
 0x13f   :  { %vm313_vm15 = vcmp.ge.s32.totalorder %v312_v30, 0  ;;  %vm314_vm0 = vcmp.lt.s32.totalorder %v312_v30, 32  ;;  %vm318_vm2 = vcmp.ge.s32.totalorder %v317_v32, 0  ;;  %vm320_vm4 = vcmp.lt.s32.totalorder %v317_v32, 128 }
 0x140   :  { %vm315_vm1 = vmand %vm313_vm15, %vm314_vm0 }
 0x141   :  { %vm319_vm3 = vmand %vm315_vm1, %vm318_vm2 }
 0x142   :  { %279 = vrot.lane.b32.xlu0 %v684_v27, %s264_s0  ;;  %303 = vrot.lane.b32.xlu1 %v686_v28, %s264_s0  ;;  %vm1195_vm5 = vmand %vm319_vm3, %vm320_vm4 }
 0x1b0   :  { %v267_v34 = vpop.permute.xlu0 %266  ;;  %v292_v35 = vpop.permute.xlu1 %291 }
 0x1b1   :  { %v268_v36 = vsel %vm1176_vm13, %v267_v34, 0.0  ;;  %v293_v37 = vsel %vm1176_vm13, %v292_v35, 0.0 }
 0x1b2   :  { %270 = vrot.lane.b32.xlu0 %v268_v36, %s1289_s3 }
 0x1b4   :  { %v280_v38 = vpop.permute.xlu0 %279  ;;  %v304_v39 = vpop.permute.xlu1 %303 }
 0x1b5   :  { %v281_v40 = vsel %vm1176_vm13, %v280_v38, 0.0  ;;  %v305_v41 = vsel %vm1176_vm13, %v304_v39, 0.0 }
 0x1b6   :  { %295 = vrot.lane.b32.xlu0 %v293_v37, %s1289_s3  ;;  %283 = vrot.lane.b32.xlu1 %v281_v40, %s1289_s3 }
 0x1ba   :  { %307 = vrot.lane.b32.xlu1 %v305_v41, %s1289_s3 }
 0x224   :  { %v271_v42 = vpop.permute.xlu0 %270 }
 0x225   :  { %274 = vst.msk [vmem:[#allocation6] sm:$0xff] %vm273_vm6, %v271_v42 }
 0x228   :  { %v284_v43 = vpop.permute.xlu1 %283  ;;  %v296_v44 = vpop.permute.xlu0 %295 }
 0x229   :  { %286 = vst.msk [vmem:[#allocation6 + $0x8] sm:$0xff] %vm273_vm6, %v284_v43  ;;  %298 = vst.msk [vmem:[#allocation6 + $0x10] sm:$0xff] %vm273_vm6, %v296_v44 }
 0x22c   :  { %v308_v45 = vpop.permute.xlu1 %307 }
 0x22d   :  { %310 = vst.msk [vmem:[#allocation6 + $0x18] sm:$0xff] %vm273_vm6, %v308_v45 }
 0x22e   :  { %896 = dma.done.wait [#allocation3 + $0x2], 512 }
 0x22f   :  { %897 = vsyncadd [#allocation3 + $0x2], 4294966784  ;;  %s1297_s24 = sld [smem:[#allocation23_spill]]  ;;  %s1298_s9 = sld [smem:[#allocation21_spill]]  ;;  %vm336_vm14 = vcmask 195712  }
 0x230   :  { %s1299_s4 = sld [smem:[#allocation22_spill]]  ;;  %s1300_s30 = sld [smem:[#allocation20_spill]] }
 0x231   :  { %s914_s12 = smov 16  }
 0x235   :  { %s327_s14 = sand.u32 127, %s1297_s24   ;;  %s576_s27 = scalar_lea.vmem [#allocation2], %s1298_s9 }
 0x236   :  { %v687_v46 = vld [vmem:[%s576_s27 + $0xc8] sm:$0xff]  ;;  %v689_v47 = vld [vmem:[%s576_s27 + $0xf8] sm:$0xff]  ;;  %v688_v48 = vld [vmem:[%s576_s27 + $0xe0] sm:$0xff]  ;;  %v374_v50 = vstv %s1299_s4 }
 0x237   :  { %329 = vrot.lane.b32.xlu0 %v687_v46, %s327_s14  ;;  %354 = vrot.lane.b32.xlu1 %v689_v47, %s327_s14  ;;  %v690_v49 = vld [vmem:[%s576_s27 + $0x110] sm:$0xff]  ;;  %v375_v51 = vadd.s32 %v374_v50, %v950_v1  ;;  %v379_v52 = vstv %s1300_s30 }
 0x238   :  { %v380_v53 = vadd.s32 %v379_v52, %v952_v2 }
 0x239   :  { %vm376_vm7 = vcmp.ge.s32.totalorder %v375_v51, 0  ;;  %vm377_vm8 = vcmp.lt.s32.totalorder %v375_v51, 32 }
 0x23a   :  { %vm378_vm9 = vmand %vm376_vm7, %vm377_vm8  ;;  %vm381_vm10 = vcmp.ge.s32.totalorder %v380_v53, 0  ;;  %vm383_vm12 = vcmp.lt.s32.totalorder %v380_v53, 128 }
 0x23b   :  { %342 = vrot.lane.b32.xlu0 %v688_v48, %s327_s14  ;;  %366 = vrot.lane.b32.xlu1 %v690_v49, %s327_s14  ;;  %vm382_vm11 = vmand %vm378_vm9, %vm381_vm10 }
 0x23c   :  { %vm1217_vm13 = vmand %vm382_vm11, %vm383_vm12 }
 0x2a9   :  { %v330_v55 = vpop.permute.xlu0 %329  ;;  %v355_v56 = vpop.permute.xlu1 %354 }
 0x2aa   :  { %v331_v57 = vsel %vm1195_vm5, %v330_v55, 0.0  ;;  %v356_v58 = vsel %vm1195_vm5, %v355_v56, 0.0 }
 0x2ab   :  { %333 = vrot.lane.b32.xlu0 %v331_v57, %s914_s12 }
 0x2ad   :  { %v343_v59 = vpop.permute.xlu0 %342  ;;  %v367_v60 = vpop.permute.xlu1 %366 }
 0x2ae   :  { %v344_v61 = vsel %vm1195_vm5, %v343_v59, 0.0  ;;  %v368_v62 = vsel %vm1195_vm5, %v367_v60, 0.0 }
 0x2af   :  { %358 = vrot.lane.b32.xlu0 %v356_v58, %s914_s12  ;;  %346 = vrot.lane.b32.xlu1 %v344_v61, %s914_s12 }
 0x2b3   :  { %370 = vrot.lane.b32.xlu1 %v368_v62, %s914_s12 }
 0x31d   :  { %v334_v63 = vpop.permute.xlu0 %333 }
 0x31e   :  { %337 = vst.msk [vmem:[#allocation6] sm:$0xff] %vm336_vm14, %v334_v63 }
 0x321   :  { %v347_v0 = vpop.permute.xlu1 %346  ;;  %v359_v3 = vpop.permute.xlu0 %358 }
 0x322   :  { %349 = vst.msk [vmem:[#allocation6 + $0x8] sm:$0xff] %vm336_vm14, %v347_v0  ;;  %361 = vst.msk [vmem:[#allocation6 + $0x10] sm:$0xff] %vm336_vm14, %v359_v3 }
 0x325   :  { %v371_v4 = vpop.permute.xlu1 %370 }
 0x326   :  { %373 = vst.msk [vmem:[#allocation6 + $0x18] sm:$0xff] %vm336_vm14, %v371_v4 }
 0x327   :  { %898 = dma.done.wait [#allocation3 + $0x3], 512 }
 0x328   :  { %899 = vsyncadd [#allocation3 + $0x3], 4294966784  ;;  %s1303_s17 = sld [smem:[#allocation24_spill]]  ;;  %s390_s8 = sand.u32 127, %s1338_s22   ;;  %v437_v9 = vstv %s1117_s6  ;;  %v442_v11 = vstv %s1105_s7  ;;  %vm399_vm6 = vcmask 261312  }
 0x329   :  { %v438_v10 = vadd.s32 %v437_v9, %v950_v1  ;;  %v443_v12 = vadd.s32 %v442_v11, %v952_v2  ;;  %s915_s6 = smov 24  }
 0x32b   :  { %vm439_vm15 = vcmp.ge.s32.totalorder %v438_v10, 0  ;;  %vm440_vm0 = vcmp.lt.s32.totalorder %v438_v10, 32  ;;  %vm444_vm2 = vcmp.ge.s32.totalorder %v443_v12, 0  ;;  %vm446_vm4 = vcmp.lt.s32.totalorder %v443_v12, 128 }
 0x32c   :  { %vm441_vm1 = vmand %vm439_vm15, %vm440_vm0 }
 0x32d   :  { %vm445_vm3 = vmand %vm441_vm1, %vm444_vm2 }
 0x32e   :  { %s584_s10 = scalar_lea.vmem [#allocation2], %s1303_s17  ;;  %vm1235_vm5 = vmand %vm445_vm3, %vm446_vm4 }
 0x32f   :  { %v691_v5 = vld [vmem:[%s584_s10 + $0x128] sm:$0xff]  ;;  %v693_v6 = vld [vmem:[%s584_s10 + $0x158] sm:$0xff]  ;;  %v692_v7 = vld [vmem:[%s584_s10 + $0x140] sm:$0xff] }
 0x330   :  { %392 = vrot.lane.b32.xlu0 %v691_v5, %s390_s8  ;;  %417 = vrot.lane.b32.xlu1 %v693_v6, %s390_s8  ;;  %v694_v8 = vld [vmem:[%s584_s10 + $0x170] sm:$0xff] }
 0x334   :  { %405 = vrot.lane.b32.xlu0 %v692_v7, %s390_s8  ;;  %429 = vrot.lane.b32.xlu1 %v694_v8, %s390_s8 }
 0x3a2   :  { %v393_v14 = vpop.permute.xlu0 %392  ;;  %v418_v15 = vpop.permute.xlu1 %417 }
 0x3a3   :  { %v394_v16 = vsel %vm1217_vm13, %v393_v14, 0.0  ;;  %v419_v1 = vsel %vm1217_vm13, %v418_v15, 0.0 }
 0x3a4   :  { %396 = vrot.lane.b32.xlu0 %v394_v16, %s915_s6 }
 0x3a6   :  { %v406_v2 = vpop.permute.xlu0 %405  ;;  %v430_v17 = vpop.permute.xlu1 %429 }
 0x3a7   :  { %v407_v18 = vsel %vm1217_vm13, %v406_v2, 0.0  ;;  %v431_v19 = vsel %vm1217_vm13, %v430_v17, 0.0 }
 0x3a8   :  { %421 = vrot.lane.b32.xlu0 %v419_v1, %s915_s6  ;;  %409 = vrot.lane.b32.xlu1 %v407_v18, %s915_s6 }
 0x3ac   :  { %433 = vrot.lane.b32.xlu1 %v431_v19, %s915_s6 }
 0x416   :  { %v397_v20 = vpop.permute.xlu0 %396 }
 0x417   :  { %400 = vst.msk [vmem:[#allocation6] sm:$0xff] %vm399_vm6, %v397_v20 }
 0x41a   :  { %v410_v21 = vpop.permute.xlu1 %409  ;;  %v422_v22 = vpop.permute.xlu0 %421 }
 0x41b   :  { %412 = vst.msk [vmem:[#allocation6 + $0x8] sm:$0xff] %vm399_vm6, %v410_v21  ;;  %424 = vst.msk [vmem:[#allocation6 + $0x10] sm:$0xff] %vm399_vm6, %v422_v22 }
 0x41e   :  { %v434_v23 = vpop.permute.xlu1 %433 }
 0x41f   :  { %436 = vst.msk [vmem:[#allocation6 + $0x18] sm:$0xff] %vm399_vm6, %v434_v23 }
 0x420   :  { %900 = dma.done.wait [#allocation3 + $0x4], 512 }
 0x421   :  { %901 = vsyncadd [#allocation3 + $0x4], 4294966784  ;;  %s453_s7 = sand.u32 127, %s1346_s18   ;;  %s592_s22 = scalar_lea.vmem [#allocation2], %s1342_s16  ;;  %vm462_vm7 = vcmask 326912  }
 0x422   :  { %v695_v24 = vld [vmem:[%s592_s22 + $0x188] sm:$0xff]  ;;  %v697_v25 = vld [vmem:[%s592_s22 + $0x1b8] sm:$0xff]  ;;  %v696_v26 = vld [vmem:[%s592_s22 + $0x1a0] sm:$0xff]  ;;  %s916_s20 = smov 32   ;;  %s917_s21 = smov [#allocation6]  }
 0x423   :  { %455 = vrot.lane.b32.xlu0 %v695_v24, %s453_s7  ;;  %480 = vrot.lane.b32.xlu1 %v697_v25, %s453_s7  ;;  %v698_v27 = vld [vmem:[%s592_s22 + $0x1d0] sm:$0xff]  ;;  %s505_s15 = sshll.u32 %s917_s21, 4  ;;  %s506_s15 = int_to_ptr.vmem [resolvable:$true] %s505_s15 }
 0x424   :  { %s868_s25 = scalar_lea.vmem %s506_s15, 512  ;;  %p873_p13 = scmp.lt.s32.totalorder %s506_s15, %s506_s15 }
 0x425   :  { %p869_p12 = scmp.ne.s32.totalorder %s506_s15, %s868_s25  ;;  %p874_p5 = scmp.lt.s32.totalorder %s868_s25, %s868_s25 }
 0x427   :  { %468 = vrot.lane.b32.xlu0 %v696_v26, %s453_s7  ;;  %492 = vrot.lane.b32.xlu1 %v698_v27, %s453_s7  ;;  %p875_p6 = por %p874_p5, %p873_p13 }
 0x429   :  { %p876_p8 = pnand %p875_p6, %p869_p12 }
 0x495   :  { %v456_v28 = vpop.permute.xlu0 %455  ;;  %v481_v29 = vpop.permute.xlu1 %480 }
 0x496   :  { %v457_v30 = vsel %vm1235_vm5, %v456_v28, 0.0  ;;  %v482_v31 = vsel %vm1235_vm5, %v481_v29, 0.0 }
 0x497   :  { %459 = vrot.lane.b32.xlu0 %v457_v30, %s916_s20 }
 0x499   :  { %v469_v32 = vpop.permute.xlu0 %468  ;;  %v493_v33 = vpop.permute.xlu1 %492 }
 0x49a   :  { %v470_v34 = vsel %vm1235_vm5, %v469_v32, 0.0  ;;  %v494_v35 = vsel %vm1235_vm5, %v493_v33, 0.0 }
 0x49b   :  { %484 = vrot.lane.b32.xlu0 %v482_v31, %s916_s20  ;;  %472 = vrot.lane.b32.xlu1 %v470_v34, %s916_s20 }
 0x49f   :  { %496 = vrot.lane.b32.xlu1 %v494_v35, %s916_s20 }
 0x509   :  { %v460_v36 = vpop.permute.xlu0 %459 }
 0x50a   :  { %463 = vst.msk [vmem:[#allocation6] sm:$0xff] %vm462_vm7, %v460_v36 }
 0x50d   :  { %v473_v37 = vpop.permute.xlu1 %472  ;;  %v485_v38 = vpop.permute.xlu0 %484 }
 0x50e   :  { %475 = vst.msk [vmem:[#allocation6 + $0x8] sm:$0xff] %vm462_vm7, %v473_v37  ;;  %487 = vst.msk [vmem:[#allocation6 + $0x10] sm:$0xff] %vm462_vm7, %v485_v38 }
 0x511   :  { %v497_v39 = vpop.permute.xlu1 %496 }
 0x512   :  { %499 = vst.msk [vmem:[#allocation6 + $0x18] sm:$0xff] %vm462_vm7, %v497_v39 }
 0x513   :  { %879 = shalt.err (!%p876_p8)
}
 0x514   :  { %s1306_s2 = sld [smem:[#allocation25_spill]] }
 0x51a   :  { %s880_s28 = scalar_lea.hbm %s1306_s2, 512 }
 0x51b   :  { %p881_p0 = scmp.ne.s32.totalorder %s1306_s2, %s880_s28  ;;  %p884_p2 = scmp.lt.u32.totalorder %s880_s28, %s1306_s2 }
 0x51d   :  { %p886_p3 = pnand %p884_p2, %p881_p0 }
 0x51f   :  { %889 = shalt.err (!%p886_p3)
}
 0x520   :  { %s918_s18 = smov 128  }
 0x521   :  { %511 = dma.vmem_to_hbm [thread:$0]  %s506_s15, 512, %s1306_s2, [#allocation7], %s918_s18, %s918_s18, %s1289_s3  }
 0x522   :  { %902 = dma.done.wait [#allocation7], 512  }
 0x523   :  { %903 = vsyncadd [#allocation7], 4294966784 }
 0x524   :  { %515 = vsyncpa [#allocation7], 1 }
 0x525   :  { %516 = vsyncmov [#allocation3] }
 0x528   :  { %s517_s0 = vpop.sfrf %516 }
 0x529   :  { %p699_p1 = scmp.ne.s32.totalorder %s517_s0, 0 }
 0x52b   :  { %521 = shalt.err (%p699_p1)  }
 0x52c   :  { %523 = vsyncmov [#allocation3 + $0x1] }
 0x52f   :  { %s524_s23 = vpop.sfrf %523 }
 0x530   :  { %p700_p10 = scmp.ne.s32.totalorder %s524_s23, 0 }
 0x532   :  { %528 = shalt.err (%p700_p10)  }
 0x533   :  { %530 = vsyncmov [#allocation3 + $0x2] }
 0x536   :  { %s531_s24 = vpop.sfrf %530 }
 0x537   :  { %p701_p9 = scmp.ne.s32.totalorder %s531_s24, 0 }
 0x539   :  { %535 = shalt.err (%p701_p9)  }
 0x53a   :  { %537 = vsyncmov [#allocation3 + $0x3] }
 0x53d   :  { %s538_s9 = vpop.sfrf %537 }
 0x53e   :  { %p702_p11 = scmp.ne.s32.totalorder %s538_s9, 0 }
 0x540   :  { %542 = shalt.err (%p702_p11)  }
 0x541   :  { %544 = vsyncmov [#allocation3 + $0x4] }
 0x544   :  { %s545_s3 = vpop.sfrf %544 }
 0x545   :  { %p703_p7 = scmp.ne.s32.totalorder %s545_s3, 0 }
 0x547   :  { %549 = shalt.err (%p703_p7)  }

</bundles_post_ra>
